<compile_context>
chip_gen: v6e
topology: v6e:2x2x1
jax: 0.10.0
libtpu: 0.0.40
codegen_flags: <defaults>
</compile_context>

<pallas_src>
import functools

import jax
import jax.numpy as jnp
from jax.experimental import pallas as pl
from jax.experimental.pallas import tpu as pltpu

_VMEM_LIMIT = 32 * 1024 * 1024


def _round_up(x, m):
    return (x + m - 1) // m * m


def _pick_bm(B, block_b):
    """Batch tile: as large as possible, but >=2 grid steps when B is big
    enough so the 'parallel' batch axis can span both v7x TensorCores."""
    bp8 = _round_up(B, 8)
    bm = min(block_b, bp8)
    if bp8 >= 16 and bm == bp8:
        bm = _round_up(pl.cdiv(bp8, 2), 8)
    return bm


# ----------------------------------------------------------------------------
# One-time parameter preparation (hoisted out of the per-call wrappers).
# PyTorch layout in: weight (out, in), bias (out,).
# Prepared layout:   weight (in_pad, out_pad) bf16, bias (1, out_pad) f32.
# ----------------------------------------------------------------------------
def prepare_single_style_params(weights, biases):
    num_layers = len(weights)
    latent = weights[0].shape[1]
    style_dim = weights[-1].shape[0]
    latent_pad = _round_up(latent, 128)
    style_pad = _round_up(style_dim, 128)
    ws, bs = [], []
    for i, (w, b) in enumerate(zip(weights, biases)):
        wt = jnp.asarray(w, jnp.float32).T                      # (in, out)
        bt = jnp.asarray(b, jnp.float32).reshape(1, -1)
        if i == 0 and latent_pad != latent:                     # pad K of layer 1
            wt = jnp.pad(wt, ((0, latent_pad - latent), (0, 0)))
        if i == num_layers - 1 and style_pad != style_dim:      # lane-dense output
            wt = jnp.pad(wt, ((0, 0), (0, style_pad - style_dim)))
            bt = jnp.pad(bt, ((0, 0), (0, style_pad - style_dim)))
        ws.append(wt.astype(jnp.bfloat16))
        bs.append(bt)                                           # f32 bias add
    return {"weights": ws, "biases": bs, "latent": latent,
            "latent_pad": latent_pad, "style_dim": style_dim,
            "style_pad": style_pad, "num_layers": num_layers}


def prepare_multi_style_params(shared_w, shared_b, unshared_w, unshared_b):
    latent = shared_w[0].shape[1]
    num_domains = unshared_w[0].shape[0]
    style_dim = unshared_w[-1].shape[1]
    latent_pad = _round_up(latent, 128)
    style_pad = _round_up(style_dim, 128)

    sw, sb = [], []
    for i, (w, b) in enumerate(zip(shared_w, shared_b)):
        wt = jnp.asarray(w, jnp.float32).T
        bt = jnp.asarray(b, jnp.float32).reshape(1, -1)
        if i == 0 and latent_pad != latent:
            wt = jnp.pad(wt, ((0, latent_pad - latent), (0, 0)))
        sw.append(wt.astype(jnp.bfloat16))
        sb.append(bt)

    uw, ub = [], []
    n_un = len(unshared_w)
    for i, (w, b) in enumerate(zip(unshared_w, unshared_b)):
        wt = jnp.transpose(jnp.asarray(w, jnp.float32), (0, 2, 1))  # (D, in, out)
        bt = jnp.asarray(b, jnp.float32).reshape(num_domains, 1, -1)
        if i == n_un - 1 and style_pad != style_dim:
            wt = jnp.pad(wt, ((0, 0), (0, 0), (0, style_pad - style_dim)))
            bt = jnp.pad(bt, ((0, 0), (0, 0), (0, style_pad - style_dim)))
        uw.append(wt.astype(jnp.bfloat16))
        ub.append(bt)

    return {"shared_w": sw, "shared_b": sb, "unshared_w": uw, "unshared_b": ub,
            "latent": latent, "latent_pad": latent_pad, "style_dim": style_dim,
            "style_pad": style_pad, "num_domains": num_domains,
            "num_shared": len(shared_w), "num_unshared": n_un}


# ----------------------------------------------------------------------------
# Kernel 1: single-style fused MLP. refs = (w1, b1, ..., wL, bL, out).
# Weights bf16 (in, out), biases f32 (1, out); f32 accumulation throughout.
# ----------------------------------------------------------------------------
def _single_style_kernel(z_ref, *refs, num_layers):
    out_ref = refs[-1]
    wb = refs[:-1]
    h = z_ref[...]                                   # bf16 activations
    for i in range(num_layers):
        acc = jnp.dot(h, wb[2 * i][...],
                      preferred_element_type=jnp.float32) + wb[2 * i + 1][...]
        if i < num_layers - 1:
            h = jnp.maximum(acc, 0.0).astype(jnp.bfloat16)
        else:
            h = acc
    out_ref[...] = h.astype(out_ref.dtype)


def mapping_network_single_style(z, prep, *, block_b=512):
    """Fused MappingNetworkSingleStyle forward on prepared params."""
    B, latent = z.shape
    latent_pad, style_dim, style_pad = (prep["latent_pad"], prep["style_dim"],
                                        prep["style_pad"])
    num_layers = prep["num_layers"]

    bm = _pick_bm(B, block_b)
    Bp = _round_up(B, bm)
    # Single small copy: batch pad + K pad + bf16 cast of z.
    zp = jnp.zeros((Bp, latent_pad), jnp.bfloat16).at[:B, :latent].set(
        z.astype(jnp.bfloat16))

    in_specs = [pl.BlockSpec((bm, latent_pad), lambda i: (i, 0))]
    args = [zp]
    for w, b in zip(prep["weights"], prep["biases"]):
        in_specs.append(pl.BlockSpec(w.shape, lambda i: (0, 0)))   # resident
        in_specs.append(pl.BlockSpec(b.shape, lambda i: (0, 0)))
        args += [w, b]

    out = pl.pallas_call(
        functools.partial(_single_style_kernel, num_layers=num_layers),
        out_shape=jax.ShapeDtypeStruct((Bp, style_pad), jnp.float32),
        grid=(Bp // bm,),
        in_specs=in_specs,
        out_specs=pl.BlockSpec((bm, style_pad), lambda i: (i, 0)),
        compiler_params=pltpu.CompilerParams(
            dimension_semantics=("parallel",),
            vmem_limit_bytes=_VMEM_LIMIT),
    )(*args)
    return out[:B, :style_dim]


# ----------------------------------------------------------------------------
# Kernel 2: multi-style = shared trunk + ONE per-domain head per batch tile.
# The batch is grouped by domain on the host; tile_dom (scalar prefetch) tells
# the unshared-weight index_map which domain slice to DMA for each tile.
# refs = (shared w/b ..., unshared w/b ..., out).
# ----------------------------------------------------------------------------
def _multi_style_kernel(tile_dom_ref, z_ref, *refs, num_shared, num_unshared):
    # tile_dom_ref is consumed by the index_maps only.
    out_ref = refs[-1]
    wb = refs[:-1]
    sh = wb[:2 * num_shared]
    un = wb[2 * num_shared:]

    h = z_ref[...]                                   # bf16
    for i in range(num_shared):                      # Linear + ReLU every layer
        acc = jnp.dot(h, sh[2 * i][...],
                      preferred_element_type=jnp.float32) + sh[2 * i + 1][...]
        h = jnp.maximum(acc, 0.0).astype(jnp.bfloat16)

    for i in range(num_unshared):                    # head of this tile's domain
        acc = jnp.dot(h, un[2 * i][0],
                      preferred_element_type=jnp.float32) + un[2 * i + 1][0]
        if i < num_unshared - 1:
            h = jnp.maximum(acc, 0.0).astype(jnp.bfloat16)
        else:
            h = acc
    out_ref[...] = h.astype(out_ref.dtype)


def mapping_network_multi_style(z, y, prep, *, block_b=512):
    """Fused MappingNetworkMultiStyle forward on prepared params.

    z: (B, latent) f32, y: (B,) int domain labels.
    """
    B, latent = z.shape
    D = prep["num_domains"]
    latent_pad, style_dim, style_pad = (prep["latent_pad"], prep["style_dim"],
                                        prep["style_pad"])
    num_shared, num_unshared = prep["num_shared"], prep["num_unshared"]

    bm = _pick_bm(B, block_b)
    T = pl.cdiv(B, bm) + D - 1          # static worst-case #tiles after grouping
    cap = T * bm

    # ---- host-side domain grouping (small, O(B)) ----
    y = jnp.asarray(y).astype(jnp.int32)
    oh = jax.nn.one_hot(y, D, dtype=jnp.int32)                     # (B, D)
    counts = jnp.sum(oh, axis=0)                                   # (D,)
    padded = ((counts + bm - 1) // bm) * bm                        # tile-aligned
    group_end = jnp.cumsum(padded).astype(jnp.int32)               # (D,)
    group_start = group_end - padded
    rank = jnp.cumsum(oh, axis=0) - oh                             # rank within domain
    rank_i = jnp.take_along_axis(rank, y[:, None], axis=1)[:, 0]
    pos = group_start[y] + rank_i                                  # row -> packed slot

    tile_start = jnp.arange(T, dtype=jnp.int32) * bm
    tile_dom = jnp.minimum(
        jnp.searchsorted(group_end, tile_start, side="right"), D - 1
    ).astype(jnp.int32)                                            # (T,)

    z_b = jnp.zeros((B, latent_pad), jnp.bfloat16).at[:, :latent].set(
        z.astype(jnp.bfloat16))
    zp = jnp.zeros((cap, latent_pad), jnp.bfloat16).at[pos].set(z_b)

    # ---- specs ----
    in_specs = [pl.BlockSpec((bm, latent_pad), lambda i, td: (i, 0))]
    args = [zp]
    for w, b in zip(prep["shared_w"], prep["shared_b"]):            # resident
        in_specs += [pl.BlockSpec(w.shape, lambda i, td: (0, 0)),
                     pl.BlockSpec(b.shape, lambda i, td: (0, 0))]
        args += [w, b]
    for w, b in zip(prep["unshared_w"], prep["unshared_b"]):         # per-tile domain
        in_specs += [pl.BlockSpec((1,) + w.shape[1:],
                                  lambda i, td: (td[i], 0, 0)),
                     pl.BlockSpec((1,) + b.shape[1:],
                                  lambda i, td: (td[i], 0, 0))]
        args += [w, b]

    out = pl.pallas_call(
        functools.partial(_multi_style_kernel, num_shared=num_shared,
                          num_unshared=num_unshared),
        out_shape=jax.ShapeDtypeStruct((cap, style_pad), jnp.float32),
        grid_spec=pltpu.PrefetchScalarGridSpec(
            num_scalar_prefetch=1,
            grid=(T,),
            in_specs=in_specs,
            out_specs=pl.BlockSpec((bm, style_pad), lambda i, td: (i, 0))),
        compiler_params=pltpu.CompilerParams(
            dimension_semantics=("parallel",),
            vmem_limit_bytes=_VMEM_LIMIT),
    )(tile_dom, *args)

    return out[pos][:, :style_dim]                    # back to original order


# ----------------------------------------------------------------------------
# MappingNetwork.forward dispatcher (mirrors the PyTorch module's forward).
# ----------------------------------------------------------------------------
def mapping_network_forward(prepared_params, z, mol=None, y=None, *,
                            single_style=True, multimodal=False):
    if single_style:
        if multimodal:
            p = prepared_params[y]  # TODO(synk): modality dispatch stays in Python (ModuleList indexing).
            return mapping_network_single_style(z, p)
        return mapping_network_single_style(z, prepared_params)
    if multimodal:
        raise NotImplementedError
    return mapping_network_multi_style(z, mol, prepared_params)


# ----------------------------------------------------------------------------
# Pure-JAX references (PyTorch-layout params, f32)
# ----------------------------------------------------------------------------
def single_style_ref(z, weights, biases):
    h = z
    for i, (w, b) in enumerate(zip(weights, biases)):
        h = h @ w.T + b
        if i < len(weights) - 1:
            h = jnp.maximum(h, 0.0)
    return h


def multi_style_ref(z, y, shared_w, shared_b, unshared_w, unshared_b):
    h = z
    for w, b in zip(shared_w, shared_b):
        h = jnp.maximum(h @ w.T + b, 0.0)
    D = unshared_w[0].shape[0]
    outs = []
    for d in range(D):
        hd = h
        for i, (w, b) in enumerate(zip(unshared_w, unshared_b)):
            hd = hd @ w[d].T + b[d]
            if i < len(unshared_w) - 1:
                hd = jnp.maximum(hd, 0.0)
        outs.append(hd)
    out = jnp.stack(outs, axis=1)                     # (B, D, style_dim)
    return out[jnp.arange(z.shape[0]), y]


if __name__ == "__main__":
    key = jax.random.PRNGKey(0)

    # ---------------- single-style (MappingNetwork defaults) ----------------
    B, LATENT, STYLE, HIDDEN, NLAYERS = 8, 160, 64, 512, 4
    dims = [LATENT] + [HIDDEN] * (NLAYERS - 1) + [STYLE]
    weights, biases = [], []
    for i in range(NLAYERS):
        key, kw, kb = jax.random.split(key, 3)
        bound = 1.0 / (dims[i] ** 0.5)
        weights.append(jax.random.uniform(kw, (dims[i + 1], dims[i]),
                                          jnp.float32, -bound, bound))
        biases.append(jax.random.uniform(kb, (dims[i + 1],),
                                         jnp.float32, -bound, bound))
    key, kz = jax.random.split(key)
    z = jax.random.normal(kz, (B, LATENT), jnp.float32)

    prep_single = prepare_single_style_params(weights, biases)   # one-time prep
    out_single = jax.block_until_ready(mapping_network_forward(prep_single, z))
    ref_single = single_style_ref(z, weights, biases)
    assert out_single.shape == (B, STYLE)
    assert jnp.allclose(out_single, ref_single, atol=2e-2, rtol=2e-2), (
        float(jnp.max(jnp.abs(out_single - ref_single))))

    # ---------------- multi-style (shared trunk + per-domain heads) ---------
    B2, LAT2, STYLE2, HID2, NDOM = 8, 16, 64, 512, 2
    shared_dims = [(LAT2, HID2), (HID2, HID2), (HID2, HID2), (HID2, HID2)]
    sw, sb = [], []
    for fan_in, fan_out in shared_dims:
        key, kw, kb = jax.random.split(key, 3)
        bound = 1.0 / (fan_in ** 0.5)
        sw.append(jax.random.uniform(kw, (fan_out, fan_in), jnp.float32,
                                     -bound, bound))
        sb.append(jax.random.uniform(kb, (fan_out,), jnp.float32,
                                     -bound, bound))
    unshared_dims = [(HID2, HID2), (HID2, HID2), (HID2, HID2), (HID2, STYLE2)]
    uw, ub = [], []
    for fan_in, fan_out in unshared_dims:
        key, kw, kb = jax.random.split(key, 3)
        bound = 1.0 / (fan_in ** 0.5)
        uw.append(jax.random.uniform(kw, (NDOM, fan_out, fan_in), jnp.float32,
                                     -bound, bound))
        ub.append(jax.random.uniform(kb, (NDOM, fan_out), jnp.float32,
                                     -bound, bound))
    key, kz2, ky = jax.random.split(key, 3)
    z2 = jax.random.normal(kz2, (B2, LAT2), jnp.float32)
    ylab = jax.random.randint(ky, (B2,), 0, NDOM)

    prep_multi = prepare_multi_style_params(sw, sb, uw, ub)      # one-time prep
    out_multi = jax.block_until_ready(
        mapping_network_forward(prep_multi, z2, mol=ylab, single_style=False))
    ref_multi = multi_style_ref(z2, ylab, sw, sb, uw, ub)
    assert out_multi.shape == (B2, STYLE2)
    assert jnp.allclose(out_multi, ref_multi, atol=2e-2, rtol=2e-2), (
        float(jnp.max(jnp.abs(out_multi - ref_multi))))

    print("KERNEL_OK")
</pallas_src>

<mosaic_0001>
module attributes {stable_mosaic.version = 11 : i64} {
  func.func @_single_style_kernel(%arg0: i32, %arg1: memref<8x256xbf16, #tpu.memory_space<vmem>>, %arg2: memref<256x512xbf16, #tpu.memory_space<vmem>>, %arg3: memref<1x512xf32, #tpu.memory_space<vmem>>, %arg4: memref<512x512xbf16, #tpu.memory_space<vmem>>, %arg5: memref<1x512xf32, #tpu.memory_space<vmem>>, %arg6: memref<512x512xbf16, #tpu.memory_space<vmem>>, %arg7: memref<1x512xf32, #tpu.memory_space<vmem>>, %arg8: memref<512x128xbf16, #tpu.memory_space<vmem>>, %arg9: memref<1x128xf32, #tpu.memory_space<vmem>>, %arg10: memref<8x128xf32, #tpu.memory_space<vmem>>) attributes {dimension_semantics = [#tpu.dimension_semantics<parallel>], iteration_bounds = array<i64: 1>, scalar_prefetch = 0 : i64, scratch_operands = 0 : i64, tpu.core_type = #tpu.core_type<tc>, window_params = [{transform_indices = @transform_0, window_bounds = array<i64: 8, 256>}, {pipeline_mode = #tpu.pipeline_mode<synchronous>, transform_indices = @transform_1, window_bounds = array<i64: 256, 512>}, {pipeline_mode = #tpu.pipeline_mode<synchronous>, transform_indices = @transform_2, window_bounds = array<i64: 1, 512>}, {pipeline_mode = #tpu.pipeline_mode<synchronous>, transform_indices = @transform_3, window_bounds = array<i64: 512, 512>}, {pipeline_mode = #tpu.pipeline_mode<synchronous>, transform_indices = @transform_4, window_bounds = array<i64: 1, 512>}, {pipeline_mode = #tpu.pipeline_mode<synchronous>, transform_indices = @transform_5, window_bounds = array<i64: 512, 512>}, {pipeline_mode = #tpu.pipeline_mode<synchronous>, transform_indices = @transform_6, window_bounds = array<i64: 1, 512>}, {pipeline_mode = #tpu.pipeline_mode<synchronous>, transform_indices = @transform_7, window_bounds = array<i64: 512, 128>}, {pipeline_mode = #tpu.pipeline_mode<synchronous>, transform_indices = @transform_8, window_bounds = array<i64: 1, 128>}, {transform_indices = @transform_9, window_bounds = array<i64: 8, 128>}]} {
    %c0 = arith.constant 0 : index
    %c0_0 = arith.constant 0 : index
    %0 = vector.load %arg1[%c0, %c0_0] : memref<8x256xbf16, #tpu.memory_space<vmem>>, vector<8x256xbf16>
    %c0_1 = arith.constant 0 : index
    %c0_2 = arith.constant 0 : index
    %1 = vector.load %arg2[%c0_1, %c0_2] : memref<256x512xbf16, #tpu.memory_space<vmem>>, vector<256x512xbf16>
    %cst = arith.constant dense<0.000000e+00> : vector<8x512xf32>
    %2 = tpu.matmul %0, %1, %cst {dimension_numbers = #tpu.dot_dimension_numbers<[1], [0], [0], [1], [0, 0, 1, 1], [], []>} : vector<8x256xbf16>, vector<256x512xbf16>, vector<8x512xf32> -> vector<8x512xf32>
    %c0_3 = arith.constant 0 : index
    %c0_4 = arith.constant 0 : index
    %3 = vector.load %arg3[%c0_3, %c0_4] : memref<1x512xf32, #tpu.memory_space<vmem>>, vector<1x512xf32>
    %4 = vector.broadcast %3 : vector<1x512xf32> to vector<8x512xf32>
    %5 = arith.addf %2, %4 : vector<8x512xf32>
    %cst_5 = arith.constant 0.000000e+00 : f32
    %6 = vector.broadcast %cst_5 : f32 to vector<8x512xf32>
    %7 = arith.maximumf %5, %6 : vector<8x512xf32>
    %8 = arith.truncf %7 : vector<8x512xf32> to vector<8x512xbf16>
    %c0_6 = arith.constant 0 : index
    %c0_7 = arith.constant 0 : index
    %9 = vector.load %arg4[%c0_6, %c0_7] : memref<512x512xbf16, #tpu.memory_space<vmem>>, vector<512x512xbf16>
    %cst_8 = arith.constant dense<0.000000e+00> : vector<8x512xf32>
    %10 = tpu.matmul %8, %9, %cst_8 {dimension_numbers = #tpu.dot_dimension_numbers<[1], [0], [0], [1], [0, 0, 1, 1], [], []>} : vector<8x512xbf16>, vector<512x512xbf16>, vector<8x512xf32> -> vector<8x512xf32>
    %c0_9 = arith.constant 0 : index
    %c0_10 = arith.constant 0 : index
    %11 = vector.load %arg5[%c0_9, %c0_10] : memref<1x512xf32, #tpu.memory_space<vmem>>, vector<1x512xf32>
    %12 = vector.broadcast %11 : vector<1x512xf32> to vector<8x512xf32>
    %13 = arith.addf %10, %12 : vector<8x512xf32>
    %cst_11 = arith.constant 0.000000e+00 : f32
    %14 = vector.broadcast %cst_11 : f32 to vector<8x512xf32>
    %15 = arith.maximumf %13, %14 : vector<8x512xf32>
    %16 = arith.truncf %15 : vector<8x512xf32> to vector<8x512xbf16>
    %c0_12 = arith.constant 0 : index
    %c0_13 = arith.constant 0 : index
    %17 = vector.load %arg6[%c0_12, %c0_13] : memref<512x512xbf16, #tpu.memory_space<vmem>>, vector<512x512xbf16>
    %cst_14 = arith.constant dense<0.000000e+00> : vector<8x512xf32>
    %18 = tpu.matmul %16, %17, %cst_14 {dimension_numbers = #tpu.dot_dimension_numbers<[1], [0], [0], [1], [0, 0, 1, 1], [], []>} : vector<8x512xbf16>, vector<512x512xbf16>, vector<8x512xf32> -> vector<8x512xf32>
    %c0_15 = arith.constant 0 : index
    %c0_16 = arith.constant 0 : index
    %19 = vector.load %arg7[%c0_15, %c0_16] : memref<1x512xf32, #tpu.memory_space<vmem>>, vector<1x512xf32>
    %20 = vector.broadcast %19 : vector<1x512xf32> to vector<8x512xf32>
    %21 = arith.addf %18, %20 : vector<8x512xf32>
    %cst_17 = arith.constant 0.000000e+00 : f32
    %22 = vector.broadcast %cst_17 : f32 to vector<8x512xf32>
    %23 = arith.maximumf %21, %22 : vector<8x512xf32>
    %24 = arith.truncf %23 : vector<8x512xf32> to vector<8x512xbf16>
    %c0_18 = arith.constant 0 : index
    %c0_19 = arith.constant 0 : index
    %25 = vector.load %arg8[%c0_18, %c0_19] : memref<512x128xbf16, #tpu.memory_space<vmem>>, vector<512x128xbf16>
    %cst_20 = arith.constant dense<0.000000e+00> : vector<8x128xf32>
    %26 = tpu.matmul %24, %25, %cst_20 {dimension_numbers = #tpu.dot_dimension_numbers<[1], [0], [0], [1], [0, 0, 1, 1], [], []>} : vector<8x512xbf16>, vector<512x128xbf16>, vector<8x128xf32> -> vector<8x128xf32>
    %c0_21 = arith.constant 0 : index
    %c0_22 = arith.constant 0 : index
    %27 = vector.load %arg9[%c0_21, %c0_22] : memref<1x128xf32, #tpu.memory_space<vmem>>, vector<1x128xf32>
    %28 = vector.broadcast %27 : vector<1x128xf32> to vector<8x128xf32>
    %29 = arith.addf %26, %28 : vector<8x128xf32>
    %c0_23 = arith.constant 0 : index
    %c0_24 = arith.constant 0 : index
    %30 = vector.load %arg10[%c0_23, %c0_24] : memref<8x128xf32, #tpu.memory_space<vmem>>, vector<8x128xf32>
    tpu.vector_store %arg10[%c0_23, %c0_24], %29 {strides = array<i32>} : memref<8x128xf32, #tpu.memory_space<vmem>>, vector<8x128xf32>,
    return
  }
  func.func @transform_0(%arg0: i32) -> (i32, i32) {
    %c0_i32 = arith.constant 0 : i32
    %c0_i32_0 = arith.constant 0 : i32
    return %arg0, %c0_i32 : i32, i32
  }
  func.func @transform_1(%arg0: i32) -> (i32, i32) {
    %c0_i32 = arith.constant 0 : i32
    %c0_i32_0 = arith.constant 0 : i32
    %c0_i32_1 = arith.constant 0 : i32
    return %c0_i32, %c0_i32_0 : i32, i32
  }
  func.func @transform_2(%arg0: i32) -> (i32, i32) {
    %c0_i32 = arith.constant 0 : i32
    %c0_i32_0 = arith.constant 0 : i32
    %c0_i32_1 = arith.constant 0 : i32
    return %c0_i32, %c0_i32_0 : i32, i32
  }
  func.func @transform_3(%arg0: i32) -> (i32, i32) {
    %c0_i32 = arith.constant 0 : i32
    %c0_i32_0 = arith.constant 0 : i32
    %c0_i32_1 = arith.constant 0 : i32
    return %c0_i32, %c0_i32_0 : i32, i32
  }
  func.func @transform_4(%arg0: i32) -> (i32, i32) {
    %c0_i32 = arith.constant 0 : i32
    %c0_i32_0 = arith.constant 0 : i32
    %c0_i32_1 = arith.constant 0 : i32
    return %c0_i32, %c0_i32_0 : i32, i32
  }
  func.func @transform_5(%arg0: i32) -> (i32, i32) {
    %c0_i32 = arith.constant 0 : i32
    %c0_i32_0 = arith.constant 0 : i32
    %c0_i32_1 = arith.constant 0 : i32
    return %c0_i32, %c0_i32_0 : i32, i32
  }
  func.func @transform_6(%arg0: i32) -> (i32, i32) {
    %c0_i32 = arith.constant 0 : i32
    %c0_i32_0 = arith.constant 0 : i32
    %c0_i32_1 = arith.constant 0 : i32
    return %c0_i32, %c0_i32_0 : i32, i32
  }
  func.func @transform_7(%arg0: i32) -> (i32, i32) {
    %c0_i32 = arith.constant 0 : i32
    %c0_i32_0 = arith.constant 0 : i32
    %c0_i32_1 = arith.constant 0 : i32
    return %c0_i32, %c0_i32_0 : i32, i32
  }
  func.func @transform_8(%arg0: i32) -> (i32, i32) {
    %c0_i32 = arith.constant 0 : i32
    %c0_i32_0 = arith.constant 0 : i32
    %c0_i32_1 = arith.constant 0 : i32
    return %c0_i32, %c0_i32_0 : i32, i32
  }
  func.func @transform_9(%arg0: i32) -> (i32, i32) {
    %c0_i32 = arith.constant 0 : i32
    %c0_i32_0 = arith.constant 0 : i32
    return %arg0, %c0_i32 : i32, i32
  }
}

</mosaic_0001>

<bundles_post_ra>
// kernel: tpu_custom_call.1
= control target key start
LH: loop header
LB: loop body
LE: loop exit
PB: predicated region body
PF: predicated region fallthrough
CT: control target
= control target key end

     0   :  { %14 = vsyncpa [#allocation3], 0  ;;  %s4118_s0 = inlined_call_operand.hbm [shape: bf16[8,256], index: 0, kind: input, shape index: {}]   ;;  %s4119_s1 = inlined_call_operand.hbm [shape: bf16[256,512], index: 1, kind: input, shape index: {}]   ;;  %s4120_s2 = inlined_call_operand.hbm [shape: f32[1,512], index: 2, kind: input, shape index: {}]   ;;  %s4121_s3 = inlined_call_operand.hbm [shape: bf16[512,512], index: 3, kind: input, shape index: {}]   ;;  %s4122_s4 = inlined_call_operand.vmem [shape: f32[1,512], index: 4, kind: input, shape index: {}]   ;;  %s4123_s5 = inlined_call_operand.hbm [shape: bf16[512,512], index: 5, kind: input, shape index: {}]   ;;  %s4124_s6 = inlined_call_operand.vmem [shape: f32[1,512], index: 6, kind: input, shape index: {}]   ;;  %s4125_s7 = inlined_call_operand.hbm [shape: bf16[512,128], index: 7, kind: input, shape index: {}]   ;;  %s4126_s8 = inlined_call_operand.vmem [shape: f32[1,128], index: 8, kind: input, shape index: {}]   ;;  %s4127_s9 = inlined_call_operand.hbm [shape: f32[8,128], index: 9, kind: output, shape index: {}]  }
   0x1   :  { %15 = vsyncpa [#allocation6], 0 }
   0x2   :  { %16 = vsyncpa [#allocation9], 0 }
   0x3   :  { %17 = vsyncpa [#allocation12], 0 }
   0x4   :  { %18 = vsyncpa [#allocation4], 0  ;;  %s3976_s30 = smov [#allocation5]  }
   0x5   :  { %s34_s10 = sshll.u32 %s3976_s30, 4  ;;  %s35_s10 = int_to_ptr.vmem [resolvable:$true] %s34_s10 }
   0x6   :  { %s3834_s11 = scalar_lea.vmem %s35_s10, 8192  ;;  %p3839_p1 = scmp.lt.s32.totalorder %s35_s10, %s35_s10 }
   0x7   :  { %p3835_p0 = scmp.ne.s32.totalorder %s35_s10, %s3834_s11  ;;  %p3840_p2 = scmp.lt.s32.totalorder %s3834_s11, %s3834_s11 }
   0x9   :  { %p3841_p3 = por %p3840_p2, %p3839_p1 }
   0xb   :  { %p3842_p4 = pnand %p3841_p3, %p3835_p0 }
   0xd   :  { %3845 = shalt.err (!%p3842_p4)
}
   0xe   :  { %s3977_s12 = smov 256   ;;  %s3978_s13 = smov 16  }
   0xf   :  { %40 = dma.hbm_to_vmem [thread:$0]  %s4119_s1, 8192, %s35_s10, [#allocation6], %s3977_s12, %s3977_s12, %s3978_s13  }
  0x10   :  { %s3979_s16 = smov [#allocation8]   ;;  %s3980_s18 = smov [#allocation2]  }
  0x11   :  { %s56_s17 = sshll.u32 %s3979_s16, 4  ;;  %s25_s19 = sshll.u32 %s3980_s18, 4  ;;  %s57_s17 = int_to_ptr.vmem [resolvable:$true] %s56_s17  ;;  %s26_s19 = int_to_ptr.vmem [resolvable:$true] %s25_s19 }
  0x12   :  { %s3854_s20 = scalar_lea.vmem %s57_s17, 16384  ;;  %p3859_p6 = scmp.lt.s32.totalorder %s57_s17, %s57_s17 }
  0x13   :  { %p3855_p5 = scmp.ne.s32.totalorder %s57_s17, %s3854_s20  ;;  %p3860_p7 = scmp.lt.s32.totalorder %s3854_s20, %s3854_s20 }
  0x15   :  { %p3861_p8 = por %p3860_p7, %p3859_p6 }
  0x17   :  { %p3862_p9 = pnand %p3861_p8, %p3855_p5 }
  0x19   :  { %3865 = shalt.err (!%p3862_p9)
}
  0x1a   :  { %62 = dma.hbm_to_vmem [thread:$0]  %s4121_s3, 16384, %s57_s17, [#allocation9], %s3977_s12, %s3977_s12, %s3978_s13  }
  0x1b   :  { %s3874_s1 = scalar_lea.vmem %s26_s19, 128  ;;  %p3879_p11 = scmp.lt.s32.totalorder %s26_s19, %s26_s19 }
  0x1c   :  { %p3875_p10 = scmp.ne.s32.totalorder %s26_s19, %s3874_s1  ;;  %p3880_p12 = scmp.lt.s32.totalorder %s3874_s1, %s3874_s1 }
  0x1e   :  { %p3881_p13 = por %p3880_p12, %p3879_p11 }
  0x20   :  { %p3882_p0 = pnand %p3881_p13, %p3875_p10 }
  0x22   :  { %3885 = shalt.err (!%p3882_p0)
}
  0x23   :  { %28 = dma.hbm_to_vmem [thread:$0]  %s4118_s0, 128, %s26_s19, [#allocation3]  }
  0x24   :  { %s3981_s25 = smov [#allocation7]   ;;  %s3982_s27 = smov [#allocation10]  }
  0x25   :  { %s47_s26 = sshll.u32 %s3981_s25, 4  ;;  %s70_s28 = sshll.u32 %s3982_s27, 4  ;;  %s48_s26 = int_to_ptr.vmem [resolvable:$true] %s47_s26  ;;  %s71_s28 = int_to_ptr.vmem [resolvable:$true] %s70_s28 }
  0x26   :  { %s3894_s29 = scalar_lea.vmem %s48_s26, 64  ;;  %p3899_p2 = scmp.lt.s32.totalorder %s48_s26, %s48_s26 }
  0x27   :  { %p3895_p1 = scmp.ne.s32.totalorder %s48_s26, %s3894_s29  ;;  %p3900_p3 = scmp.lt.s32.totalorder %s3894_s29, %s3894_s29 }
  0x29   :  { %p3901_p4 = por %p3900_p3, %p3899_p2 }
  0x2b   :  { %p3902_p5 = pnand %p3901_p4, %p3895_p1 }
  0x2d   :  { %3905 = shalt.err (!%p3902_p5)
}
  0x2e   :  { %50 = dma.hbm_to_vmem [thread:$0]  %s4120_s2, 64, %s48_s26, [#allocation6]  }
  0x2f   :  { %s3914_s10 = scalar_lea.vmem %s71_s28, 16384  ;;  %p3919_p7 = scmp.lt.s32.totalorder %s71_s28, %s71_s28 }
  0x30   :  { %p3915_p6 = scmp.ne.s32.totalorder %s71_s28, %s3914_s10  ;;  %p3920_p8 = scmp.lt.s32.totalorder %s3914_s10, %s3914_s10 }
  0x32   :  { %p3921_p9 = por %p3920_p8, %p3919_p7 }
  0x34   :  { %p3922_p10 = pnand %p3921_p9, %p3915_p6 }
  0x36   :  { %3925 = shalt.err (!%p3922_p10)
}
  0x37   :  { %76 = dma.hbm_to_vmem [thread:$0]  %s4123_s5, 16384, %s71_s28, [#allocation9], %s3977_s12, %s3977_s12, %s3978_s13  }
  0x38   :  { %s3983_s14 = smov [#allocation11]  }
  0x39   :  { %s84_s15 = sshll.u32 %s3983_s14, 4  ;;  %s85_s15 = int_to_ptr.vmem [resolvable:$true] %s84_s15 }
  0x3a   :  { %s3934_s16 = scalar_lea.vmem %s85_s15, 4096  ;;  %p3939_p12 = scmp.lt.s32.totalorder %s85_s15, %s85_s15 }
  0x3b   :  { %p3935_p11 = scmp.ne.s32.totalorder %s85_s15, %s3934_s16  ;;  %p3940_p13 = scmp.lt.s32.totalorder %s3934_s16, %s3934_s16 }
  0x3d   :  { %p3941_p0 = por %p3940_p13, %p3939_p12 }
  0x3f   :  { %p3942_p1 = pnand %p3941_p0, %p3935_p11 }
  0x41   :  { %3945 = shalt.err (!%p3942_p1)
}
  0x42   :  { %s3984_s2 = smov 64   ;;  %s3985_s17 = smov 4  }
  0x43   :  { %90 = dma.hbm_to_vmem [thread:$0]  %s4125_s7, 4096, %s85_s15, [#allocation12], %s3984_s2, %s3984_s2, %s3985_s17  }
  0x44   :  { %3966 = dma.done.wait [#allocation3], 128  }
  0x45   :  { %3967 = vsyncadd [#allocation3], 4294967168 }
  0x46   :  { %3968 = dma.done.wait [#allocation6], 8256  }
  0x47   :  { %3969 = vsyncadd [#allocation6], 4294959040 }
  0x48   :  { %3970 = dma.done.wait [#allocation9], 32768  }
  0x49   :  { %3971 = vsyncadd [#allocation9], 4294934528 }
  0x4a   :  { %3972 = dma.done.wait [#allocation12], 4096  }
  0x4b   :  { %3973 = vsyncadd [#allocation12], 4294963200  ;;  %v3312_v0 = vld [vmem:[#allocation5 + $0xe4] ss:$16 sps:$4 sm:$0xff]   ;;  %v3314_v1 = vld [vmem:[#allocation5 + $0xec] ss:$16 sps:$4 sm:$0xff]  }
  0x4c   :  { %526 = vmatprep.subr.bf16.mxu0 %v3312_v0  ;;  %v3316_v2 = vld [vmem:[#allocation5 + $0xe0] ss:$16 sps:$4 sm:$0xff]   ;;  %v3317_v3 = vld [vmem:[#allocation5 + $0xe8] ss:$16 sps:$4 sm:$0xff]   ;;  %567 = vmatprep.subr.bf16.mxu1 %v3314_v1  ;;  %v3318_v4 = vld [vmem:[#allocation5 + $0xc4] ss:$16 sps:$4 sm:$0xff]  }
  0x4d   :  { %527 = vmatpush1.bf16.msra.mxu0 %v3316_v2  ;;  %568 = vmatpush1.bf16.msra.mxu1 %v3317_v3  ;;  %v3320_v5 = vld [vmem:[#allocation5 + $0xcc] ss:$16 sps:$4 sm:$0xff]   ;;  %v3322_v6 = vld [vmem:[#allocation5 + $0xc0] ss:$16 sps:$4 sm:$0xff]   ;;  %v3323_v7 = vld [vmem:[#allocation5 + $0xc8] ss:$16 sps:$4 sm:$0xff]  }
  0x4e   :  { %528 = vmatprep.subr.bf16.mxu0 %v3318_v4  ;;  %569 = vmatprep.subr.bf16.mxu1 %v3320_v5  ;;  %v3324_v8 = vld [vmem:[#allocation5 + $0xa4] ss:$16 sps:$4 sm:$0xff]   ;;  %v3326_v9 = vld [vmem:[#allocation5 + $0xac] ss:$16 sps:$4 sm:$0xff]   ;;  %v3328_v10 = vld [vmem:[#allocation5 + $0xa0] ss:$16 sps:$4 sm:$0xff]  }
  0x4f   :  { %v3329_v11 = vld [vmem:[#allocation5 + $0xa8] ss:$16 sps:$4 sm:$0xff]   ;;  %v3330_v12 = vld [vmem:[#allocation5 + $0x84] ss:$16 sps:$4 sm:$0xff]   ;;  %v3332_v13 = vld [vmem:[#allocation5 + $0x8c] ss:$16 sps:$4 sm:$0xff]  }
  0x50   :  { %v3334_v14 = vld [vmem:[#allocation5 + $0x80] ss:$16 sps:$4 sm:$0xff]   ;;  %v3335_v15 = vld [vmem:[#allocation5 + $0x88] ss:$16 sps:$4 sm:$0xff]   ;;  %v3336_v16 = vld [vmem:[#allocation5 + $0x64] ss:$16 sps:$4 sm:$0xff]  }
  0x51   :  { %529 = vmatpush1.bf16.msra.mxu0 %v3322_v6  ;;  %570 = vmatpush1.bf16.msra.mxu1 %v3323_v7  ;;  %v3338_v17 = vld [vmem:[#allocation5 + $0x6c] ss:$16 sps:$4 sm:$0xff]   ;;  %v3340_v18 = vld [vmem:[#allocation5 + $0x60] ss:$16 sps:$4 sm:$0xff]   ;;  %v3341_v19 = vld [vmem:[#allocation5 + $0x68] ss:$16 sps:$4 sm:$0xff]  }
  0x52   :  { %530 = vmatprep.subr.bf16.mxu0 %v3324_v8  ;;  %571 = vmatprep.subr.bf16.mxu1 %v3326_v9  ;;  %v3342_v20 = vld [vmem:[#allocation5 + $0x44] ss:$16 sps:$4 sm:$0xff]   ;;  %v3344_v21 = vld [vmem:[#allocation5 + $0x4c] ss:$16 sps:$4 sm:$0xff]   ;;  %v3346_v22 = vld [vmem:[#allocation5 + $0x40] ss:$16 sps:$4 sm:$0xff]  }
  0x53   :  { %v3347_v23 = vld [vmem:[#allocation5 + $0x48] ss:$16 sps:$4 sm:$0xff]   ;;  %v3348_v24 = vld [vmem:[#allocation5 + $0x24] ss:$16 sps:$4 sm:$0xff]   ;;  %v3350_v25 = vld [vmem:[#allocation5 + $0x2c] ss:$16 sps:$4 sm:$0xff]  }
  0x54   :  { %v3352_v26 = vld [vmem:[#allocation5 + $0x20] ss:$16 sps:$4 sm:$0xff]   ;;  %v3353_v27 = vld [vmem:[#allocation5 + $0x28] ss:$16 sps:$4 sm:$0xff]   ;;  %v3354_v28 = vld [vmem:[#allocation5 + $0x4] ss:$16 sps:$4 sm:$0xff]  }
  0x55   :  { %531 = vmatpush1.bf16.msra.mxu0 %v3328_v10  ;;  %572 = vmatpush1.bf16.msra.mxu1 %v3329_v11  ;;  %v3356_v29 = vld [vmem:[#allocation5 + $0xc] ss:$16 sps:$4 sm:$0xff]   ;;  %v3358_v30 = vld [vmem:[#allocation5] ss:$16 sps:$4 sm:$0xff]   ;;  %v3359_v31 = vld [vmem:[#allocation5 + $0x8] ss:$16 sps:$4 sm:$0xff]  }
  0x56   :  { %532 = vmatprep.subr.bf16.mxu0 %v3330_v12  ;;  %573 = vmatprep.subr.bf16.mxu1 %v3332_v13  ;;  %v3360_v32 = vld [vmem:[#allocation5 + $0x1e4] ss:$16 sps:$4 sm:$0xff]   ;;  %v3362_v33 = vld [vmem:[#allocation5 + $0x1ec] ss:$16 sps:$4 sm:$0xff]   ;;  %v3364_v34 = vld [vmem:[#allocation5 + $0x1e0] ss:$16 sps:$4 sm:$0xff]  }
  0x57   :  { %v3365_v35 = vld [vmem:[#allocation5 + $0x1e8] ss:$16 sps:$4 sm:$0xff]   ;;  %v3366_v36 = vld [vmem:[#allocation5 + $0x1c4] ss:$16 sps:$4 sm:$0xff]   ;;  %v3368_v37 = vld [vmem:[#allocation5 + $0x1cc] ss:$16 sps:$4 sm:$0xff]  }
  0x58   :  { %v3370_v38 = vld [vmem:[#allocation5 + $0x1c0] ss:$16 sps:$4 sm:$0xff]   ;;  %v3371_v39 = vld [vmem:[#allocation5 + $0x1c8] ss:$16 sps:$4 sm:$0xff]   ;;  %v3372_v40 = vld [vmem:[#allocation5 + $0x1a4] ss:$16 sps:$4 sm:$0xff]  }
  0x59   :  { %533 = vmatpush1.bf16.msra.mxu0 %v3334_v14  ;;  %574 = vmatpush1.bf16.msra.mxu1 %v3335_v15  ;;  %v3374_v41 = vld [vmem:[#allocation5 + $0x1ac] ss:$16 sps:$4 sm:$0xff]   ;;  %v3376_v42 = vld [vmem:[#allocation5 + $0x1a0] ss:$16 sps:$4 sm:$0xff]   ;;  %v3377_v43 = vld [vmem:[#allocation5 + $0x1a8] ss:$16 sps:$4 sm:$0xff]  }
  0x5a   :  { %534 = vmatprep.subr.bf16.mxu0 %v3336_v16  ;;  %575 = vmatprep.subr.bf16.mxu1 %v3338_v17  ;;  %v3378_v44 = vld [vmem:[#allocation5 + $0x184] ss:$16 sps:$4 sm:$0xff]   ;;  %v3380_v45 = vld [vmem:[#allocation5 + $0x18c] ss:$16 sps:$4 sm:$0xff]   ;;  %v3382_v47 = vld [vmem:[#allocation5 + $0x180] ss:$16 sps:$4 sm:$0xff]  }
  0x5b   :  { %v112_v46 = vld [vmem:[#allocation2] sm:$0xff]  ;;  %v3384_v50 = vld [vmem:[#allocation5 + $0x164] ss:$16 sps:$4 sm:$0xff]   ;;  %v3388_v52 = vld [vmem:[#allocation5 + $0x160] ss:$16 sps:$4 sm:$0xff]   ;;  %s3986_s20 = smov [#allocation13]  }
  0x5c   :  { %v2903_v48 = vcombine.high %v112_v46, %v112_v46  ;;  %v3383_v49 = vld [vmem:[#allocation5 + $0x188] ss:$16 sps:$4 sm:$0xff]   ;;  %v3386_v51 = vld [vmem:[#allocation5 + $0x16c] ss:$16 sps:$4 sm:$0xff]   ;;  %v3390_v54 = vld [vmem:[#allocation5 + $0x144] ss:$16 sps:$4 sm:$0xff]   ;;  %v2902_v4 = vcombine.low %v112_v46, %v112_v46 }
  0x5d   :  { %535 = vmatpush1.bf16.msra.mxu0 %v3340_v18  ;;  %576 = vmatpush1.bf16.msra.mxu1 %v3341_v19  ;;  %v3389_v53 = vld [vmem:[#allocation5 + $0x168] ss:$16 sps:$4 sm:$0xff]   ;;  %v3392_v55 = vld [vmem:[#allocation5 + $0x14c] ss:$16 sps:$4 sm:$0xff]   ;;  %v3394_v56 = vld [vmem:[#allocation5 + $0x140] ss:$16 sps:$4 sm:$0xff]  }
  0x5e   :  { %536 = vmatprep.subr.bf16.mxu0 %v3342_v20  ;;  %577 = vmatprep.subr.bf16.mxu1 %v3344_v21  ;;  %v3395_v57 = vld [vmem:[#allocation5 + $0x148] ss:$16 sps:$4 sm:$0xff]   ;;  %v3396_v58 = vld [vmem:[#allocation5 + $0x124] ss:$16 sps:$4 sm:$0xff]   ;;  %v3398_v59 = vld [vmem:[#allocation5 + $0x12c] ss:$16 sps:$4 sm:$0xff]  }
  0x5f   :  { %558 = vmatprep.mubr.bf16.mxu0 %v2903_v48  ;;  %599 = vmatprep.mubr.bf16.mxu1 %v2903_v48  ;;  %v3400_v60 = vld [vmem:[#allocation5 + $0x120] ss:$16 sps:$4 sm:$0xff]   ;;  %v3401_v61 = vld [vmem:[#allocation5 + $0x128] ss:$16 sps:$4 sm:$0xff]   ;;  %v3402_v62 = vld [vmem:[#allocation5 + $0x104] ss:$16 sps:$4 sm:$0xff]  }
  0x60   :  { %v3404_v63 = vld [vmem:[#allocation5 + $0x10c] ss:$16 sps:$4 sm:$0xff]   ;;  %v3406_v0 = vld [vmem:[#allocation5 + $0x100] ss:$16 sps:$4 sm:$0xff]   ;;  %v3407_v1 = vld [vmem:[#allocation5 + $0x108] ss:$16 sps:$4 sm:$0xff]  }
  0x61   :  { %537 = vmatpush1.bf16.msra.mxu0 %v3346_v22  ;;  %578 = vmatpush1.bf16.msra.mxu1 %v3347_v23  ;;  %v3412_v2 = vld [vmem:[#allocation8 + $0xe4] ss:$16 sps:$4 sm:$0xff]   ;;  %v3410_v5 = vld [vmem:[#allocation8 + $0xe0] ss:$16 sps:$4 sm:$0xff]   ;;  %s2890_s21 = sshll.u32 %s3986_s20, 4  ;;  %s2891_s21 = int_to_ptr.vmem [resolvable:$true] %s2890_s21 }
  0x62   :  { %538 = vmatprep.subr.bf16.mxu0 %v3348_v24  ;;  %579 = vmatprep.subr.bf16.mxu1 %v3350_v25  ;;  %v3415_v3 = vld [vmem:[#allocation8 + $0x2e4] ss:$16 sps:$4 sm:$0xff]   ;;  %v3413_v6 = vld [vmem:[#allocation8 + $0x2e0] ss:$16 sps:$4 sm:$0xff]   ;;  %s3946_s22 = scalar_lea.vmem %s2891_s21, 128  ;;  %p3951_p3 = scmp.lt.s32.totalorder %s2891_s21, %s2891_s21 }
  0x63   :  { %v3418_v7 = vld [vmem:[#allocation8 + $0xc4] ss:$16 sps:$4 sm:$0xff]   ;;  %v3416_v9 = vld [vmem:[#allocation8 + $0xc0] ss:$16 sps:$4 sm:$0xff]   ;;  %p3947_p2 = scmp.ne.s32.totalorder %s2891_s21, %s3946_s22  ;;  %p3952_p4 = scmp.lt.s32.totalorder %s3946_s22, %s3946_s22 }
  0x64   :  { %v3421_v8 = vld [vmem:[#allocation8 + $0x2c4] ss:$16 sps:$4 sm:$0xff]   ;;  %v3419_v10 = vld [vmem:[#allocation8 + $0x2c0] ss:$16 sps:$4 sm:$0xff]  }
  0x65   :  { %539 = vmatpush1.bf16.msra.mxu0 %v3352_v26  ;;  %580 = vmatpush1.bf16.msra.mxu1 %v3353_v27  ;;  %v3424_v11 = vld [vmem:[#allocation8 + $0xa4] ss:$16 sps:$4 sm:$0xff]   ;;  %v3422_v13 = vld [vmem:[#allocation8 + $0xa0] ss:$16 sps:$4 sm:$0xff]   ;;  %p3953_p5 = por %p3952_p4, %p3951_p3 }
  0x66   :  { %540 = vmatprep.subr.bf16.mxu0 %v3354_v28  ;;  %581 = vmatprep.subr.bf16.mxu1 %v3356_v29  ;;  %v3427_v12 = vld [vmem:[#allocation8 + $0x2a4] ss:$16 sps:$4 sm:$0xff]   ;;  %v3425_v14 = vld [vmem:[#allocation8 + $0x2a0] ss:$16 sps:$4 sm:$0xff]  }
  0x67   :  { %v3430_v15 = vld [vmem:[#allocation8 + $0x84] ss:$16 sps:$4 sm:$0xff]   ;;  %v3428_v17 = vld [vmem:[#allocation8 + $0x80] ss:$16 sps:$4 sm:$0xff]   ;;  %p3954_p6 = pnand %p3953_p5, %p3947_p2 }
  0x68   :  { %v3433_v16 = vld [vmem:[#allocation8 + $0x284] ss:$16 sps:$4 sm:$0xff]   ;;  %v3431_v18 = vld [vmem:[#allocation8 + $0x280] ss:$16 sps:$4 sm:$0xff]  }
  0x69   :  { %541 = vmatpush1.bf16.msra.mxu0 %v3358_v30  ;;  %582 = vmatpush1.bf16.msra.mxu1 %v3359_v31  ;;  %v3436_v19 = vld [vmem:[#allocation8 + $0x64] ss:$16 sps:$4 sm:$0xff]   ;;  %v3434_v21 = vld [vmem:[#allocation8 + $0x60] ss:$16 sps:$4 sm:$0xff]  }
  0x6a   :  { %542 = vmatprep.subr.bf16.mxu0 %v3360_v32  ;;  %583 = vmatprep.subr.bf16.mxu1 %v3362_v33  ;;  %v3439_v20 = vld [vmem:[#allocation8 + $0x264] ss:$16 sps:$4 sm:$0xff]   ;;  %v3437_v22 = vld [vmem:[#allocation8 + $0x260] ss:$16 sps:$4 sm:$0xff]  }
  0x6b   :  { %v3442_v23 = vld [vmem:[#allocation8 + $0x44] ss:$16 sps:$4 sm:$0xff]   ;;  %v3440_v25 = vld [vmem:[#allocation8 + $0x40] ss:$16 sps:$4 sm:$0xff]  }
  0x6c   :  { %v3445_v24 = vld [vmem:[#allocation8 + $0x244] ss:$16 sps:$4 sm:$0xff]   ;;  %v3443_v26 = vld [vmem:[#allocation8 + $0x240] ss:$16 sps:$4 sm:$0xff]  }
  0x6d   :  { %543 = vmatpush2.bf16.msra.mxu0 %v3364_v34  ;;  %584 = vmatpush2.bf16.msra.mxu1 %v3365_v35  ;;  %v3448_v27 = vld [vmem:[#allocation8 + $0x24] ss:$16 sps:$4 sm:$0xff]   ;;  %v3446_v29 = vld [vmem:[#allocation8 + $0x20] ss:$16 sps:$4 sm:$0xff]  }
  0x6e   :  { %544 = vmatprep.subr.bf16.mxu0 %v3366_v36  ;;  %585 = vmatprep.subr.bf16.mxu1 %v3368_v37  ;;  %v3451_v28 = vld [vmem:[#allocation8 + $0x224] ss:$16 sps:$4 sm:$0xff]   ;;  %v3449_v30 = vld [vmem:[#allocation8 + $0x220] ss:$16 sps:$4 sm:$0xff]  }
  0x6f   :  { %v3454_v31 = vld [vmem:[#allocation8 + $0x4] ss:$16 sps:$4 sm:$0xff]   ;;  %v3452_v33 = vld [vmem:[#allocation8] ss:$16 sps:$4 sm:$0xff]  }
  0x70   :  { %v3457_v32 = vld [vmem:[#allocation8 + $0x204] ss:$16 sps:$4 sm:$0xff]   ;;  %v3455_v34 = vld [vmem:[#allocation8 + $0x200] ss:$16 sps:$4 sm:$0xff]  }
  0x71   :  { %545 = vmatpush2.bf16.msra.mxu0 %v3370_v38  ;;  %586 = vmatpush2.bf16.msra.mxu1 %v3371_v39  ;;  %v3460_v35 = vld [vmem:[#allocation8 + $0x1e4] ss:$16 sps:$4 sm:$0xff]   ;;  %v3458_v37 = vld [vmem:[#allocation8 + $0x1e0] ss:$16 sps:$4 sm:$0xff]  }
  0x72   :  { %546 = vmatprep.subr.bf16.mxu0 %v3372_v40  ;;  %587 = vmatprep.subr.bf16.mxu1 %v3374_v41  ;;  %v3463_v36 = vld [vmem:[#allocation8 + $0x3e4] ss:$16 sps:$4 sm:$0xff]   ;;  %v3461_v38 = vld [vmem:[#allocation8 + $0x3e0] ss:$16 sps:$4 sm:$0xff]  }
  0x73   :  { %v3466_v39 = vld [vmem:[#allocation8 + $0x1c4] ss:$16 sps:$4 sm:$0xff]   ;;  %v3464_v41 = vld [vmem:[#allocation8 + $0x1c0] ss:$16 sps:$4 sm:$0xff]  }
  0x74   :  { %v3469_v40 = vld [vmem:[#allocation8 + $0x3c4] ss:$16 sps:$4 sm:$0xff]   ;;  %v3473_v46 = vld [vmem:[#allocation8 + $0x3a0] ss:$16 sps:$4 sm:$0xff]  }
  0x75   :  { %547 = vmatpush2.bf16.msra.mxu0 %v3376_v42  ;;  %588 = vmatpush2.bf16.msra.mxu1 %v3377_v43  ;;  %v3467_v42 = vld [vmem:[#allocation8 + $0x3c0] ss:$16 sps:$4 sm:$0xff]   ;;  %v3472_v43 = vld [vmem:[#allocation8 + $0x1a4] ss:$16 sps:$4 sm:$0xff]  }
  0x76   :  { %548 = vmatprep.subr.bf16.mxu0 %v3378_v44  ;;  %589 = vmatprep.subr.bf16.mxu1 %v3380_v45  ;;  %v3475_v44 = vld [vmem:[#allocation8 + $0x3a4] ss:$16 sps:$4 sm:$0xff]   ;;  %v3470_v45 = vld [vmem:[#allocation8 + $0x1a0] ss:$16 sps:$4 sm:$0xff]  }
  0x77   :  { %v3481_v48 = vld [vmem:[#allocation8 + $0x384] ss:$16 sps:$4 sm:$0xff]  }
  0x79   :  { %549 = vmatpush2.bf16.msra.mxu0 %v3382_v47  ;;  %590 = vmatpush2.bf16.msra.mxu1 %v3383_v49  ;;  %v3478_v47 = vld [vmem:[#allocation8 + $0x184] ss:$16 sps:$4 sm:$0xff]   ;;  %v3476_v49 = vld [vmem:[#allocation8 + $0x180] ss:$16 sps:$4 sm:$0xff]  }
  0x7a   :  { %550 = vmatprep.subr.bf16.mxu0 %v3384_v50  ;;  %591 = vmatprep.subr.bf16.mxu1 %v3386_v51  ;;  %v3479_v50 = vld [vmem:[#allocation8 + $0x380] ss:$16 sps:$4 sm:$0xff]   ;;  %v3484_v51 = vld [vmem:[#allocation8 + $0x164] ss:$16 sps:$4 sm:$0xff]  }
  0x7d   :  { %551 = vmatpush2.bf16.msra.mxu0 %v3388_v52  ;;  %592 = vmatpush2.bf16.msra.mxu1 %v3389_v53  ;;  %v3487_v52 = vld [vmem:[#allocation8 + $0x364] ss:$16 sps:$4 sm:$0xff]   ;;  %v3482_v53 = vld [vmem:[#allocation8 + $0x160] ss:$16 sps:$4 sm:$0xff]  }
  0x7e   :  { %552 = vmatprep.subr.bf16.mxu0 %v3390_v54  ;;  %593 = vmatprep.subr.bf16.mxu1 %v3392_v55  ;;  %v3485_v54 = vld [vmem:[#allocation8 + $0x360] ss:$16 sps:$4 sm:$0xff]   ;;  %v3490_v55 = vld [vmem:[#allocation8 + $0x144] ss:$16 sps:$4 sm:$0xff]  }
  0x81   :  { %553 = vmatpush2.bf16.msra.mxu0 %v3394_v56  ;;  %594 = vmatpush2.bf16.msra.mxu1 %v3395_v57  ;;  %v3493_v56 = vld [vmem:[#allocation8 + $0x344] ss:$16 sps:$4 sm:$0xff]   ;;  %v3488_v57 = vld [vmem:[#allocation8 + $0x140] ss:$16 sps:$4 sm:$0xff]  }
  0x82   :  { %554 = vmatprep.subr.bf16.mxu0 %v3396_v58  ;;  %595 = vmatprep.subr.bf16.mxu1 %v3398_v59  ;;  %v3491_v58 = vld [vmem:[#allocation8 + $0x340] ss:$16 sps:$4 sm:$0xff]   ;;  %v3496_v59 = vld [vmem:[#allocation8 + $0x124] ss:$16 sps:$4 sm:$0xff]  }
  0x85   :  { %555 = vmatpush2.bf16.msra.mxu0 %v3400_v60  ;;  %596 = vmatpush2.bf16.msra.mxu1 %v3401_v61  ;;  %v3499_v60 = vld [vmem:[#allocation8 + $0x324] ss:$16 sps:$4 sm:$0xff]   ;;  %v3494_v61 = vld [vmem:[#allocation8 + $0x120] ss:$16 sps:$4 sm:$0xff]  }
  0x86   :  { %556 = vmatprep.subr.bf16.mxu0 %v3402_v62  ;;  %597 = vmatprep.subr.bf16.mxu1 %v3404_v63  ;;  %v3497_v62 = vld [vmem:[#allocation8 + $0x320] ss:$16 sps:$4 sm:$0xff]   ;;  %v3502_v63 = vld [vmem:[#allocation8 + $0x104] ss:$16 sps:$4 sm:$0xff]  }
  0x89   :  { %557 = vmatpush2.bf16.msra.mxu0 %v3406_v0  ;;  %598 = vmatpush2.bf16.msra.mxu1 %v3407_v1  ;;  %v3505_v0 = vld [vmem:[#allocation8 + $0x304] ss:$16 sps:$4 sm:$0xff]   ;;  %v3500_v1 = vld [vmem:[#allocation8 + $0x100] ss:$16 sps:$4 sm:$0xff]  }
  0x8a   :  { %1406 = vmatprep.subr.bf16.mxu0 %v3412_v2  ;;  %1447 = vmatprep.subr.bf16.mxu1 %v3415_v3  ;;  %v3503_v2 = vld [vmem:[#allocation8 + $0x300] ss:$16 sps:$4 sm:$0xff]   ;;  %v3508_v3 = vld [vmem:[#allocation8 + $0xec] ss:$16 sps:$4 sm:$0xff]  }
  0x8c   :  { %559 = vmatmul.mubr.bf16.vlgmr.msra.gmra.mxu0 %v2902_v4  ;;  %600 = vmatmul.mubr.bf16.vlgmr.msra.gmra.mxu1 %v2902_v4  ;;  %v3511_v4 = vld [vmem:[#allocation8 + $0x2ec] ss:$16 sps:$4 sm:$0xff]  }
  0x8d   :  { %1407 = vmatpush1.bf16.msra.mxu0 %v3410_v5  ;;  %1448 = vmatpush1.bf16.msra.mxu1 %v3413_v6  ;;  %v179_v5 = vlaneseq }
  0x8e   :  { %1408 = vmatprep.subr.bf16.mxu0 %v3418_v7  ;;  %1449 = vmatprep.subr.bf16.mxu1 %v3421_v8 }
  0x8f   :  { %v180_v6 = vshrl.u32 %v179_v5, 7  ;;  %v3557_v5 = vld [vmem:[#allocation8 + $0x3e8] ss:$16 sps:$4 sm:$0xff]  }
  0x91   :  { %1409 = vmatpush1.bf16.msra.mxu0 %v3416_v9  ;;  %1450 = vmatpush1.bf16.msra.mxu1 %v3419_v10  ;;  %v4064_v7 = vsub.s32 0, %v180_v6  ;;  %v4066_v8 = vsub.s32 2, %v180_v6  ;;  %v177_v9 = vld [vmem:[#allocation7] sm:$0xf]  ;;  %v4068_v10 = vsub.s32 1, %v180_v6 }
  0x92   :  { %1410 = vmatprep.subr.bf16.mxu0 %v3424_v11  ;;  %1451 = vmatprep.subr.bf16.mxu1 %v3427_v12  ;;  %v4070_v11 = vsub.s32 3, %v180_v6  ;;  %v3562_v6 = vld [vmem:[#allocation8 + $0x1cc] ss:$16 sps:$4 sm:$0xff]  }
  0x93   :  { %v182_v12 = vrot.slane %v177_v9, %v4064_v7 }
  0x95   :  { %1411 = vmatpush1.bf16.msra.mxu0 %v3422_v13  ;;  %1452 = vmatpush1.bf16.msra.mxu1 %v3425_v14  ;;  %v190_v13 = vrot.slane %v177_v9, %v4066_v8  ;;  %v186_v14 = vrot.slane %v177_v9, %v4068_v10 }
  0x96   :  { %1412 = vmatprep.subr.bf16.mxu0 %v3430_v15  ;;  %1453 = vmatprep.subr.bf16.mxu1 %v3433_v16  ;;  %v194_v15 = vrot.slane %v177_v9, %v4070_v11  ;;  %v3565_v9 = vld [vmem:[#allocation8 + $0x3cc] ss:$16 sps:$4 sm:$0xff]  }
  0x99   :  { %1413 = vmatpush1.bf16.msra.mxu0 %v3428_v17  ;;  %1454 = vmatpush1.bf16.msra.mxu1 %v3431_v18 }
  0x9a   :  { %1414 = vmatprep.subr.bf16.mxu0 %v3436_v19  ;;  %1455 = vmatprep.subr.bf16.mxu1 %v3439_v20 }
  0x9d   :  { %1415 = vmatpush1.bf16.msra.mxu0 %v3434_v21  ;;  %1456 = vmatpush1.bf16.msra.mxu1 %v3437_v22 }
  0x9e   :  { %1416 = vmatprep.subr.bf16.mxu0 %v3442_v23  ;;  %1457 = vmatprep.subr.bf16.mxu1 %v3445_v24 }
  0xa1   :  { %1417 = vmatpush1.bf16.msra.mxu0 %v3440_v25  ;;  %1458 = vmatpush1.bf16.msra.mxu1 %v3443_v26 }
  0xa2   :  { %1418 = vmatprep.subr.bf16.mxu0 %v3448_v27  ;;  %1459 = vmatprep.subr.bf16.mxu1 %v3451_v28 }
  0xa5   :  { %1419 = vmatpush1.bf16.msra.mxu0 %v3446_v29  ;;  %1460 = vmatpush1.bf16.msra.mxu1 %v3449_v30 }
  0xa6   :  { %1420 = vmatprep.subr.bf16.mxu0 %v3454_v31  ;;  %1461 = vmatprep.subr.bf16.mxu1 %v3457_v32 }
  0xa9   :  { %1421 = vmatpush1.bf16.msra.mxu0 %v3452_v33  ;;  %1462 = vmatpush1.bf16.msra.mxu1 %v3455_v34 }
  0xaa   :  { %1422 = vmatprep.subr.bf16.mxu0 %v3460_v35  ;;  %1463 = vmatprep.subr.bf16.mxu1 %v3463_v36  ;;  %v3506_v35 = vld [vmem:[#allocation8 + $0xe8] ss:$16 sps:$4 sm:$0xff]  }
  0xab   :  { %v3509_v36 = vld [vmem:[#allocation8 + $0x2e8] ss:$16 sps:$4 sm:$0xff]  }
  0xad   :  { %1423 = vmatpush2.bf16.msra.mxu0 %v3458_v37  ;;  %1464 = vmatpush2.bf16.msra.mxu1 %v3461_v38  ;;  %v3514_v38 = vld [vmem:[#allocation8 + $0xcc] ss:$16 sps:$4 sm:$0xff]  }
  0xae   :  { %1424 = vmatprep.subr.bf16.mxu0 %v3466_v39  ;;  %1465 = vmatprep.subr.bf16.mxu1 %v3469_v40  ;;  %v3517_v39 = vld [vmem:[#allocation8 + $0x2cc] ss:$16 sps:$4 sm:$0xff]   ;;  %v3512_v40 = vld [vmem:[#allocation8 + $0xc8] ss:$16 sps:$4 sm:$0xff]  }
  0xb1   :  { %1425 = vmatpush2.bf16.msra.mxu0 %v3464_v41  ;;  %1466 = vmatpush2.bf16.msra.mxu1 %v3467_v42  ;;  %v3515_v41 = vld [vmem:[#allocation8 + $0x2c8] ss:$16 sps:$4 sm:$0xff]   ;;  %v3520_v42 = vld [vmem:[#allocation8 + $0xac] ss:$16 sps:$4 sm:$0xff]  }
  0xb2   :  { %1426 = vmatprep.subr.bf16.mxu0 %v3472_v43  ;;  %1467 = vmatprep.subr.bf16.mxu1 %v3475_v44  ;;  %v3523_v43 = vld [vmem:[#allocation8 + $0x2ac] ss:$16 sps:$4 sm:$0xff]   ;;  %v3518_v44 = vld [vmem:[#allocation8 + $0xa8] ss:$16 sps:$4 sm:$0xff]  }
  0xb5   :  { %1427 = vmatpush2.bf16.msra.mxu0 %v3470_v45  ;;  %1468 = vmatpush2.bf16.msra.mxu1 %v3473_v46  ;;  %v3521_v45 = vld [vmem:[#allocation8 + $0x2a8] ss:$16 sps:$4 sm:$0xff]   ;;  %v3526_v46 = vld [vmem:[#allocation8 + $0x8c] ss:$16 sps:$4 sm:$0xff]  }
  0xb6   :  { %1428 = vmatprep.subr.bf16.mxu0 %v3478_v47  ;;  %1469 = vmatprep.subr.bf16.mxu1 %v3481_v48  ;;  %v3529_v47 = vld [vmem:[#allocation8 + $0x28c] ss:$16 sps:$4 sm:$0xff]   ;;  %v3524_v48 = vld [vmem:[#allocation8 + $0x88] ss:$16 sps:$4 sm:$0xff]  }
  0xb9   :  { %1429 = vmatpush2.bf16.msra.mxu0 %v3476_v49  ;;  %1470 = vmatpush2.bf16.msra.mxu1 %v3479_v50  ;;  %v3527_v49 = vld [vmem:[#allocation8 + $0x288] ss:$16 sps:$4 sm:$0xff]   ;;  %v3532_v50 = vld [vmem:[#allocation8 + $0x6c] ss:$16 sps:$4 sm:$0xff]  }
  0xba   :  { %1430 = vmatprep.subr.bf16.mxu0 %v3484_v51  ;;  %1471 = vmatprep.subr.bf16.mxu1 %v3487_v52  ;;  %v3535_v51 = vld [vmem:[#allocation8 + $0x26c] ss:$16 sps:$4 sm:$0xff]   ;;  %v3530_v52 = vld [vmem:[#allocation8 + $0x68] ss:$16 sps:$4 sm:$0xff]  }
  0xbd   :  { %1431 = vmatpush2.bf16.msra.mxu0 %v3482_v53  ;;  %1472 = vmatpush2.bf16.msra.mxu1 %v3485_v54  ;;  %v3533_v53 = vld [vmem:[#allocation8 + $0x268] ss:$16 sps:$4 sm:$0xff]   ;;  %v3538_v54 = vld [vmem:[#allocation8 + $0x4c] ss:$16 sps:$4 sm:$0xff]  }
  0xbe   :  { %1432 = vmatprep.subr.bf16.mxu0 %v3490_v55  ;;  %1473 = vmatprep.subr.bf16.mxu1 %v3493_v56  ;;  %v3541_v55 = vld [vmem:[#allocation8 + $0x24c] ss:$16 sps:$4 sm:$0xff]   ;;  %v3536_v56 = vld [vmem:[#allocation8 + $0x48] ss:$16 sps:$4 sm:$0xff]  }
  0xc1   :  { %1433 = vmatpush2.bf16.msra.mxu0 %v3488_v57  ;;  %1474 = vmatpush2.bf16.msra.mxu1 %v3491_v58  ;;  %v3539_v57 = vld [vmem:[#allocation8 + $0x248] ss:$16 sps:$4 sm:$0xff]   ;;  %v3544_v58 = vld [vmem:[#allocation8 + $0x2c] ss:$16 sps:$4 sm:$0xff]  }
  0xc2   :  { %1434 = vmatprep.subr.bf16.mxu0 %v3496_v59  ;;  %1475 = vmatprep.subr.bf16.mxu1 %v3499_v60  ;;  %v3547_v59 = vld [vmem:[#allocation8 + $0x22c] ss:$16 sps:$4 sm:$0xff]   ;;  %v3542_v60 = vld [vmem:[#allocation8 + $0x28] ss:$16 sps:$4 sm:$0xff]  }
  0xc5   :  { %1435 = vmatpush2.bf16.msra.mxu0 %v3494_v61  ;;  %1476 = vmatpush2.bf16.msra.mxu1 %v3497_v62  ;;  %v3545_v61 = vld [vmem:[#allocation8 + $0x228] ss:$16 sps:$4 sm:$0xff]   ;;  %v3550_v62 = vld [vmem:[#allocation8 + $0xc] ss:$16 sps:$4 sm:$0xff]  }
  0xc6   :  { %1436 = vmatprep.subr.bf16.mxu0 %v3502_v63  ;;  %1477 = vmatprep.subr.bf16.mxu1 %v3505_v0  ;;  %v3553_v63 = vld [vmem:[#allocation8 + $0x20c] ss:$16 sps:$4 sm:$0xff]   ;;  %v3548_v0 = vld [vmem:[#allocation8 + $0x8] ss:$16 sps:$4 sm:$0xff]  }
  0xc9   :  { %1437 = vmatpush2.bf16.msra.mxu0 %v3500_v1  ;;  %1478 = vmatpush2.bf16.msra.mxu1 %v3503_v2  ;;  %v3551_v1 = vld [vmem:[#allocation8 + $0x208] ss:$16 sps:$4 sm:$0xff]   ;;  %v3556_v2 = vld [vmem:[#allocation8 + $0x1ec] ss:$16 sps:$4 sm:$0xff]  }
  0xca   :  { %1488 = vmatprep.subr.bf16.mxu0 %v3508_v3  ;;  %1529 = vmatprep.subr.bf16.mxu1 %v3511_v4  ;;  %v3559_v3 = vld [vmem:[#allocation8 + $0x3ec] ss:$16 sps:$4 sm:$0xff]   ;;  %v3554_v4 = vld [vmem:[#allocation8 + $0x1e8] ss:$16 sps:$4 sm:$0xff]  }
 0x14c   :  { %v560_v16 = vpop.f32.mrf.mxu0  ;;  %v601_v17 = vpop.f32.mrf.mxu1 }
 0x14d   :  { %v561_v18 = vadd.f32 %v560_v16, %v182_v12  ;;  %v602_v19 = vadd.f32 %v601_v17, %v190_v13  ;;  %v3560_v12 = vld [vmem:[#allocation8 + $0x1c8] ss:$16 sps:$4 sm:$0xff]  }
 0x14e   :  { %v562_v20 = vpop.f32.mrf.mxu0  ;;  %v603_v21 = vpop.f32.mrf.mxu1  ;;  %v3563_v13 = vld [vmem:[#allocation8 + $0x3c8] ss:$16 sps:$4 sm:$0xff]  }
 0x14f   :  { %v610_v22 = vmax.f32 %v602_v19, 0.0  ;;  %v563_v23 = vadd.f32 %v562_v20, %v186_v14  ;;  %v604_v24 = vadd.f32 %v603_v21, %v194_v15  ;;  %v608_v25 = vmax.f32 %v561_v18, 0.0  ;;  %v3568_v14 = vld [vmem:[#allocation8 + $0x1ac] ss:$16 sps:$4 sm:$0xff]   ;;  %v3566_v16 = vld [vmem:[#allocation8 + $0x1a8] ss:$16 sps:$4 sm:$0xff]  }
 0x150   :  { %v564_v26 = vpop.f32.mrf.mxu0  ;;  %v605_v27 = vpop.f32.mrf.mxu1  ;;  %v3571_v15 = vld [vmem:[#allocation8 + $0x3ac] ss:$16 sps:$4 sm:$0xff]   ;;  %v3569_v17 = vld [vmem:[#allocation8 + $0x3a8] ss:$16 sps:$4 sm:$0xff]  }
 0x151   :  { %v609_v28 = vmax.f32 %v563_v23, 0.0  ;;  %v611_v29 = vmax.f32 %v604_v24, 0.0  ;;  %v4076_v30 = vpack.c.bf16 %v610_v22, %v610_v22  ;;  %v4078_v37 = vpack.c.bf16 %v608_v25, %v608_v25  ;;  %v3574_v18 = vld [vmem:[#allocation8 + $0x18c] ss:$16 sps:$4 sm:$0xff]   ;;  %v3572_v20 = vld [vmem:[#allocation8 + $0x188] ss:$16 sps:$4 sm:$0xff]  }
 0x152   :  { %v565_v31 = vpop.f32.mrf.mxu0  ;;  %v606_v32 = vpop.f32.mrf.mxu1  ;;  %v3577_v19 = vld [vmem:[#allocation8 + $0x38c] ss:$16 sps:$4 sm:$0xff]   ;;  %v3575_v21 = vld [vmem:[#allocation8 + $0x388] ss:$16 sps:$4 sm:$0xff]  }
 0x153   :  { %v613_v33 = vpack.c.bf16 %v609_v28, %v609_v28  ;;  %v615_v34 = vpack.c.bf16 %v611_v29, %v611_v29  ;;  %v3580_v22 = vld [vmem:[#allocation8 + $0x16c] ss:$16 sps:$4 sm:$0xff]   ;;  %v3578_v24 = vld [vmem:[#allocation8 + $0x168] ss:$16 sps:$4 sm:$0xff]  }
 0x154   :  { %v3583_v23 = vld [vmem:[#allocation8 + $0x36c] ss:$16 sps:$4 sm:$0xff]   ;;  %v3581_v25 = vld [vmem:[#allocation8 + $0x368] ss:$16 sps:$4 sm:$0xff]  }
 0x155   :  { %1438 = vmatprep.mubr.bf16.mxu0 %v613_v33  ;;  %1479 = vmatprep.mubr.bf16.mxu1 %v615_v34  ;;  %v3586_v26 = vld [vmem:[#allocation8 + $0x14c] ss:$16 sps:$4 sm:$0xff]   ;;  %v3584_v28 = vld [vmem:[#allocation8 + $0x148] ss:$16 sps:$4 sm:$0xff]  }
 0x156   :  { %1439 = vmatmul.mubr.bf16.vlgmr.msra.gmra.mxu0 %v4078_v37  ;;  %1480 = vmatmul.mubr.bf16.vlgmr.msra.gmra.mxu1 %v4076_v30  ;;  %v3589_v27 = vld [vmem:[#allocation8 + $0x34c] ss:$16 sps:$4 sm:$0xff]   ;;  %v3587_v29 = vld [vmem:[#allocation8 + $0x348] ss:$16 sps:$4 sm:$0xff]  }
 0x157   :  { %1489 = vmatpush1.bf16.msra.mxu0 %v3506_v35  ;;  %1530 = vmatpush1.bf16.msra.mxu1 %v3509_v36  ;;  %v3592_v31 = vld [vmem:[#allocation8 + $0x12c] ss:$16 sps:$4 sm:$0xff]  }
 0x158   :  { %1520 = vmatprep.mubr.bf16.mxu0 %v613_v33  ;;  %1561 = vmatprep.mubr.bf16.mxu1 %v615_v34  ;;  %v3595_v32 = vld [vmem:[#allocation8 + $0x32c] ss:$16 sps:$4 sm:$0xff]   ;;  %v3590_v33 = vld [vmem:[#allocation8 + $0x128] ss:$16 sps:$4 sm:$0xff]  }
 0x159   :  { %1490 = vmatprep.subr.bf16.mxu0 %v3514_v38  ;;  %1531 = vmatprep.subr.bf16.mxu1 %v3517_v39  ;;  %v3593_v34 = vld [vmem:[#allocation8 + $0x328] ss:$16 sps:$4 sm:$0xff]   ;;  %v3598_v35 = vld [vmem:[#allocation8 + $0x10c] ss:$16 sps:$4 sm:$0xff]  }
 0x15a   :  { %v3601_v36 = vld [vmem:[#allocation8 + $0x30c] ss:$16 sps:$4 sm:$0xff]   ;;  %v3596_v38 = vld [vmem:[#allocation8 + $0x108] ss:$16 sps:$4 sm:$0xff]  }
 0x15b   :  { %1491 = vmatpush1.bf16.msra.mxu0 %v3512_v40  ;;  %1532 = vmatpush1.bf16.msra.mxu1 %v3515_v41  ;;  %v3599_v39 = vld [vmem:[#allocation8 + $0x308] ss:$16 sps:$4 sm:$0xff]   ;;  %v3604_v40 = vld [vmem:[#allocation10 + $0xe4] ss:$16 sps:$4 sm:$0xff]   ;;  %v3602_v41 = vld [vmem:[#allocation10 + $0xe0] ss:$16 sps:$4 sm:$0xff]  }
 0x15c   :  { %1492 = vmatprep.subr.bf16.mxu0 %v3520_v42  ;;  %1533 = vmatprep.subr.bf16.mxu1 %v3523_v43  ;;  %v3607_v42 = vld [vmem:[#allocation10 + $0xc4] ss:$16 sps:$4 sm:$0xff]   ;;  %v3605_v43 = vld [vmem:[#allocation10 + $0xc0] ss:$16 sps:$4 sm:$0xff]  }
 0x15f   :  { %1493 = vmatpush1.bf16.msra.mxu0 %v3518_v44  ;;  %1534 = vmatpush1.bf16.msra.mxu1 %v3521_v45  ;;  %v3610_v44 = vld [vmem:[#allocation10 + $0xa4] ss:$16 sps:$4 sm:$0xff]   ;;  %v3608_v45 = vld [vmem:[#allocation10 + $0xa0] ss:$16 sps:$4 sm:$0xff]  }
 0x160   :  { %1494 = vmatprep.subr.bf16.mxu0 %v3526_v46  ;;  %1535 = vmatprep.subr.bf16.mxu1 %v3529_v47  ;;  %v3613_v46 = vld [vmem:[#allocation10 + $0x84] ss:$16 sps:$4 sm:$0xff]   ;;  %v3611_v47 = vld [vmem:[#allocation10 + $0x80] ss:$16 sps:$4 sm:$0xff]  }
 0x163   :  { %1495 = vmatpush1.bf16.msra.mxu0 %v3524_v48  ;;  %1536 = vmatpush1.bf16.msra.mxu1 %v3527_v49  ;;  %v3650_v48 = vld [vmem:[#allocation10 + $0x2e0] ss:$16 sps:$4 sm:$0xff]   ;;  %v3652_v49 = vld [vmem:[#allocation10 + $0x2e4] ss:$16 sps:$4 sm:$0xff]  }
 0x164   :  { %1496 = vmatprep.subr.bf16.mxu0 %v3532_v50  ;;  %1537 = vmatprep.subr.bf16.mxu1 %v3535_v51  ;;  %v3616_v50 = vld [vmem:[#allocation10 + $0x64] ss:$16 sps:$4 sm:$0xff]   ;;  %v3656_v51 = vld [vmem:[#allocation10 + $0x2c0] ss:$16 sps:$4 sm:$0xff]  }
 0x167   :  { %1497 = vmatpush1.bf16.msra.mxu0 %v3530_v52  ;;  %1538 = vmatpush1.bf16.msra.mxu1 %v3533_v53  ;;  %v3619_v52 = vld [vmem:[#allocation10 + $0x44] ss:$16 sps:$4 sm:$0xff]   ;;  %v3617_v53 = vld [vmem:[#allocation10 + $0x40] ss:$16 sps:$4 sm:$0xff]  }
 0x168   :  { %1498 = vmatprep.subr.bf16.mxu0 %v3538_v54  ;;  %1539 = vmatprep.subr.bf16.mxu1 %v3541_v55  ;;  %v3662_v54 = vld [vmem:[#allocation10 + $0x2a0] ss:$16 sps:$4 sm:$0xff]   ;;  %v3664_v55 = vld [vmem:[#allocation10 + $0x2a4] ss:$16 sps:$4 sm:$0xff]  }
 0x16b   :  { %1499 = vmatpush1.bf16.msra.mxu0 %v3536_v56  ;;  %1540 = vmatpush1.bf16.msra.mxu1 %v3539_v57  ;;  %v3622_v56 = vld [vmem:[#allocation10 + $0x24] ss:$16 sps:$4 sm:$0xff]   ;;  %v3620_v57 = vld [vmem:[#allocation10 + $0x20] ss:$16 sps:$4 sm:$0xff]  }
 0x16c   :  { %1500 = vmatprep.subr.bf16.mxu0 %v3544_v58  ;;  %1541 = vmatprep.subr.bf16.mxu1 %v3547_v59  ;;  %v3668_v58 = vld [vmem:[#allocation10 + $0x280] ss:$16 sps:$4 sm:$0xff]   ;;  %v3670_v59 = vld [vmem:[#allocation10 + $0x284] ss:$16 sps:$4 sm:$0xff]  }
 0x16f   :  { %1501 = vmatpush1.bf16.msra.mxu0 %v3542_v60  ;;  %1542 = vmatpush1.bf16.msra.mxu1 %v3545_v61  ;;  %v3625_v60 = vld [vmem:[#allocation10 + $0x4] ss:$16 sps:$4 sm:$0xff]   ;;  %v3623_v61 = vld [vmem:[#allocation10] ss:$16 sps:$4 sm:$0xff]  }
 0x170   :  { %1502 = vmatprep.subr.bf16.mxu0 %v3550_v62  ;;  %1543 = vmatprep.subr.bf16.mxu1 %v3553_v63  ;;  %v3674_v62 = vld [vmem:[#allocation10 + $0x260] ss:$16 sps:$4 sm:$0xff]   ;;  %v3676_v63 = vld [vmem:[#allocation10 + $0x264] ss:$16 sps:$4 sm:$0xff]  }
 0x173   :  { %1503 = vmatpush1.bf16.msra.mxu0 %v3548_v0  ;;  %1544 = vmatpush1.bf16.msra.mxu1 %v3551_v1  ;;  %v3628_v0 = vld [vmem:[#allocation10 + $0x1e4] ss:$16 sps:$4 sm:$0xff]   ;;  %v3626_v1 = vld [vmem:[#allocation10 + $0x1e0] ss:$16 sps:$4 sm:$0xff]  }
 0x174   :  { %1504 = vmatprep.subr.bf16.mxu0 %v3556_v2  ;;  %1545 = vmatprep.subr.bf16.mxu1 %v3559_v3  ;;  %v3680_v2 = vld [vmem:[#allocation10 + $0x240] ss:$16 sps:$4 sm:$0xff]   ;;  %v3682_v3 = vld [vmem:[#allocation10 + $0x244] ss:$16 sps:$4 sm:$0xff]  }
 0x177   :  { %1505 = vmatpush2.bf16.msra.mxu0 %v3554_v4  ;;  %1546 = vmatpush2.bf16.msra.mxu1 %v3557_v5  ;;  %v3631_v4 = vld [vmem:[#allocation10 + $0x1c4] ss:$16 sps:$4 sm:$0xff]   ;;  %v3629_v5 = vld [vmem:[#allocation10 + $0x1c0] ss:$16 sps:$4 sm:$0xff]  }
 0x178   :  { %1506 = vmatprep.subr.bf16.mxu0 %v3562_v6  ;;  %1547 = vmatprep.subr.bf16.mxu1 %v3565_v9  ;;  %v3686_v6 = vld [vmem:[#allocation10 + $0x220] ss:$16 sps:$4 sm:$0xff]   ;;  %v3688_v9 = vld [vmem:[#allocation10 + $0x224] ss:$16 sps:$4 sm:$0xff]  }
 0x17b   :  { %1507 = vmatpush2.bf16.msra.mxu0 %v3560_v12  ;;  %1548 = vmatpush2.bf16.msra.mxu1 %v3563_v13  ;;  %v3634_v12 = vld [vmem:[#allocation10 + $0x1a4] ss:$16 sps:$4 sm:$0xff]   ;;  %v3632_v13 = vld [vmem:[#allocation10 + $0x1a0] ss:$16 sps:$4 sm:$0xff]  }
 0x17c   :  { %1508 = vmatprep.subr.bf16.mxu0 %v3568_v14  ;;  %1549 = vmatprep.subr.bf16.mxu1 %v3571_v15  ;;  %v3692_v14 = vld [vmem:[#allocation10 + $0x200] ss:$16 sps:$4 sm:$0xff]   ;;  %v3694_v15 = vld [vmem:[#allocation10 + $0x204] ss:$16 sps:$4 sm:$0xff]  }
 0x17f   :  { %1509 = vmatpush2.bf16.msra.mxu0 %v3566_v16  ;;  %1550 = vmatpush2.bf16.msra.mxu1 %v3569_v17  ;;  %v3637_v16 = vld [vmem:[#allocation10 + $0x184] ss:$16 sps:$4 sm:$0xff]   ;;  %v3635_v17 = vld [vmem:[#allocation10 + $0x180] ss:$16 sps:$4 sm:$0xff]  }
 0x180   :  { %1510 = vmatprep.subr.bf16.mxu0 %v3574_v18  ;;  %1551 = vmatprep.subr.bf16.mxu1 %v3577_v19  ;;  %v3698_v18 = vld [vmem:[#allocation10 + $0x3e0] ss:$16 sps:$4 sm:$0xff]   ;;  %v3700_v19 = vld [vmem:[#allocation10 + $0x3e4] ss:$16 sps:$4 sm:$0xff]  }
 0x183   :  { %1511 = vmatpush2.bf16.msra.mxu0 %v3572_v20  ;;  %1552 = vmatpush2.bf16.msra.mxu1 %v3575_v21  ;;  %v3640_v20 = vld [vmem:[#allocation10 + $0x164] ss:$16 sps:$4 sm:$0xff]   ;;  %v3638_v21 = vld [vmem:[#allocation10 + $0x160] ss:$16 sps:$4 sm:$0xff]  }
 0x184   :  { %1512 = vmatprep.subr.bf16.mxu0 %v3580_v22  ;;  %1553 = vmatprep.subr.bf16.mxu1 %v3583_v23  ;;  %v3704_v22 = vld [vmem:[#allocation10 + $0x3c0] ss:$16 sps:$4 sm:$0xff]   ;;  %v3706_v23 = vld [vmem:[#allocation10 + $0x3c4] ss:$16 sps:$4 sm:$0xff]  }
 0x187   :  { %1513 = vmatpush2.bf16.msra.mxu0 %v3578_v24  ;;  %1554 = vmatpush2.bf16.msra.mxu1 %v3581_v25  ;;  %v3643_v24 = vld [vmem:[#allocation10 + $0x144] ss:$16 sps:$4 sm:$0xff]   ;;  %v3641_v25 = vld [vmem:[#allocation10 + $0x140] ss:$16 sps:$4 sm:$0xff]  }
 0x188   :  { %1514 = vmatprep.subr.bf16.mxu0 %v3586_v26  ;;  %1555 = vmatprep.subr.bf16.mxu1 %v3589_v27  ;;  %v3710_v26 = vld [vmem:[#allocation10 + $0x3a0] ss:$16 sps:$4 sm:$0xff]   ;;  %v3712_v27 = vld [vmem:[#allocation10 + $0x3a4] ss:$16 sps:$4 sm:$0xff]  }
 0x18b   :  { %1515 = vmatpush2.bf16.msra.mxu0 %v3584_v28  ;;  %1556 = vmatpush2.bf16.msra.mxu1 %v3587_v29  ;;  %v3646_v28 = vld [vmem:[#allocation10 + $0x124] ss:$16 sps:$4 sm:$0xff]   ;;  %v3644_v29 = vld [vmem:[#allocation10 + $0x120] ss:$16 sps:$4 sm:$0xff]  }
 0x18c   :  { %1516 = vmatprep.subr.bf16.mxu0 %v3592_v31  ;;  %1557 = vmatprep.subr.bf16.mxu1 %v3595_v32  ;;  %v3716_v31 = vld [vmem:[#allocation10 + $0x380] ss:$16 sps:$4 sm:$0xff]   ;;  %v3718_v32 = vld [vmem:[#allocation10 + $0x384] ss:$16 sps:$4 sm:$0xff]  }
 0x18f   :  { %1517 = vmatpush2.bf16.msra.mxu0 %v3590_v33  ;;  %1558 = vmatpush2.bf16.msra.mxu1 %v3593_v34  ;;  %v3649_v33 = vld [vmem:[#allocation10 + $0x104] ss:$16 sps:$4 sm:$0xff]   ;;  %v3647_v34 = vld [vmem:[#allocation10 + $0x100] ss:$16 sps:$4 sm:$0xff]  }
 0x190   :  { %1518 = vmatprep.subr.bf16.mxu0 %v3598_v35  ;;  %1559 = vmatprep.subr.bf16.mxu1 %v3601_v36  ;;  %v3722_v35 = vld [vmem:[#allocation10 + $0x360] ss:$16 sps:$4 sm:$0xff]   ;;  %v3724_v36 = vld [vmem:[#allocation10 + $0x364] ss:$16 sps:$4 sm:$0xff]  }
 0x193   :  { %1519 = vmatpush2.bf16.msra.mxu0 %v3596_v38  ;;  %1560 = vmatpush2.bf16.msra.mxu1 %v3599_v39  ;;  %v3655_v38 = vld [vmem:[#allocation10 + $0xec] ss:$16 sps:$4 sm:$0xff]   ;;  %v3728_v39 = vld [vmem:[#allocation10 + $0x340] ss:$16 sps:$4 sm:$0xff]  }
 0x194   :  { %2368 = vmatprep.subr.bf16.mxu0 %v3604_v40  ;;  %2409 = vmatprep.subr.bf16.mxu1 %v3652_v49  ;;  %v3730_v40 = vld [vmem:[#allocation10 + $0x344] ss:$16 sps:$4 sm:$0xff]  }
 0x196   :  { %1521 = vmatmul.mubr.bf16.vlgmr.msra.gmra.mxu0 %v4078_v37  ;;  %1562 = vmatmul.mubr.bf16.vlgmr.msra.gmra.mxu1 %v4076_v30  ;;  %v3614_v37 = vld [vmem:[#allocation10 + $0x60] ss:$16 sps:$4 sm:$0xff]   ;;  %v3658_v30 = vld [vmem:[#allocation10 + $0x2c4] ss:$16 sps:$4 sm:$0xff]  }
 0x197   :  { %2369 = vmatpush1.bf16.msra.mxu0 %v3602_v41  ;;  %2410 = vmatpush1.bf16.msra.mxu1 %v3650_v48  ;;  %v3736_v41 = vld [vmem:[#allocation10 + $0x324] ss:$16 sps:$4 sm:$0xff]  }
 0x198   :  { %2370 = vmatprep.subr.bf16.mxu0 %v3607_v42  ;;  %2411 = vmatprep.subr.bf16.mxu1 %v3658_v30  ;;  %v3734_v42 = vld [vmem:[#allocation10 + $0x320] ss:$16 sps:$4 sm:$0xff]  }
 0x19b   :  { %2371 = vmatpush1.bf16.msra.mxu0 %v3605_v43  ;;  %2412 = vmatpush1.bf16.msra.mxu1 %v3656_v51  ;;  %v3742_v43 = vld [vmem:[#allocation10 + $0x304] ss:$16 sps:$4 sm:$0xff]  }
 0x19c   :  { %2372 = vmatprep.subr.bf16.mxu0 %v3610_v44  ;;  %2413 = vmatprep.subr.bf16.mxu1 %v3664_v55  ;;  %v3740_v44 = vld [vmem:[#allocation10 + $0x300] ss:$16 sps:$4 sm:$0xff]  }
 0x19f   :  { %2373 = vmatpush1.bf16.msra.mxu0 %v3608_v45  ;;  %2414 = vmatpush1.bf16.msra.mxu1 %v3662_v54  ;;  %v3748_v45 = vld [vmem:[#allocation10 + $0x2ec] ss:$16 sps:$4 sm:$0xff]  }
 0x1a0   :  { %2374 = vmatprep.subr.bf16.mxu0 %v3613_v46  ;;  %2415 = vmatprep.subr.bf16.mxu1 %v3670_v59  ;;  %v4087_v46 = vld [vmem:[%s4122_s4] sm:$0xf] }
 0x1a1   :  { %v753_v48 = vrot.slane %v4087_v46, %v4068_v10 }
 0x1a3   :  { %2375 = vmatpush1.bf16.msra.mxu0 %v3611_v47  ;;  %2416 = vmatpush1.bf16.msra.mxu1 %v3668_v58  ;;  %v749_v47 = vrot.slane %v4087_v46, %v4064_v7 }
 0x1a4   :  { %2376 = vmatprep.subr.bf16.mxu0 %v3616_v50  ;;  %2417 = vmatprep.subr.bf16.mxu1 %v3676_v63 }
 0x1a7   :  { %2377 = vmatpush1.bf16.msra.mxu0 %v3614_v37  ;;  %2418 = vmatpush1.bf16.msra.mxu1 %v3674_v62  ;;  %v3653_v62 = vld [vmem:[#allocation10 + $0xe8] ss:$16 sps:$4 sm:$0xff]  }
 0x1a8   :  { %2378 = vmatprep.subr.bf16.mxu0 %v3619_v52  ;;  %2419 = vmatprep.subr.bf16.mxu1 %v3682_v3  ;;  %v3665_v3 = vld [vmem:[#allocation10 + $0xa8] ss:$16 sps:$4 sm:$0xff]  }
 0x1ab   :  { %2379 = vmatpush1.bf16.msra.mxu0 %v3617_v53  ;;  %2420 = vmatpush1.bf16.msra.mxu1 %v3680_v2  ;;  %v3667_v2 = vld [vmem:[#allocation10 + $0xac] ss:$16 sps:$4 sm:$0xff]  }
 0x1ac   :  { %2380 = vmatprep.subr.bf16.mxu0 %v3622_v56  ;;  %2421 = vmatprep.subr.bf16.mxu1 %v3688_v9  ;;  %v3677_v9 = vld [vmem:[#allocation10 + $0x68] ss:$16 sps:$4 sm:$0xff]  }
 0x1af   :  { %2381 = vmatpush1.bf16.msra.mxu0 %v3620_v57  ;;  %2422 = vmatpush1.bf16.msra.mxu1 %v3686_v6  ;;  %v3679_v6 = vld [vmem:[#allocation10 + $0x6c] ss:$16 sps:$4 sm:$0xff]  }
 0x1b0   :  { %2382 = vmatprep.subr.bf16.mxu0 %v3625_v60  ;;  %2423 = vmatprep.subr.bf16.mxu1 %v3694_v15  ;;  %v3689_v15 = vld [vmem:[#allocation10 + $0x28] ss:$16 sps:$4 sm:$0xff]  }
 0x1b3   :  { %2383 = vmatpush1.bf16.msra.mxu0 %v3623_v61  ;;  %2424 = vmatpush1.bf16.msra.mxu1 %v3692_v14  ;;  %v3691_v14 = vld [vmem:[#allocation10 + $0x2c] ss:$16 sps:$4 sm:$0xff]  }
 0x1b4   :  { %2384 = vmatprep.subr.bf16.mxu0 %v3628_v0  ;;  %2425 = vmatprep.subr.bf16.mxu1 %v3700_v19  ;;  %v3661_v0 = vld [vmem:[#allocation10 + $0xcc] ss:$16 sps:$4 sm:$0xff]   ;;  %v3701_v19 = vld [vmem:[#allocation10 + $0x1e8] ss:$16 sps:$4 sm:$0xff]  }
 0x1b7   :  { %2385 = vmatpush2.bf16.msra.mxu0 %v3626_v1  ;;  %2426 = vmatpush2.bf16.msra.mxu1 %v3698_v18  ;;  %v3659_v1 = vld [vmem:[#allocation10 + $0xc8] ss:$16 sps:$4 sm:$0xff]   ;;  %v3703_v18 = vld [vmem:[#allocation10 + $0x1ec] ss:$16 sps:$4 sm:$0xff]  }
 0x1b8   :  { %2386 = vmatprep.subr.bf16.mxu0 %v3631_v4  ;;  %2427 = vmatprep.subr.bf16.mxu1 %v3706_v23  ;;  %v3673_v4 = vld [vmem:[#allocation10 + $0x8c] ss:$16 sps:$4 sm:$0xff]   ;;  %v3713_v23 = vld [vmem:[#allocation10 + $0x1a8] ss:$16 sps:$4 sm:$0xff]  }
 0x1bb   :  { %2387 = vmatpush2.bf16.msra.mxu0 %v3629_v5  ;;  %2428 = vmatpush2.bf16.msra.mxu1 %v3704_v22  ;;  %v3671_v5 = vld [vmem:[#allocation10 + $0x88] ss:$16 sps:$4 sm:$0xff]   ;;  %v3715_v22 = vld [vmem:[#allocation10 + $0x1ac] ss:$16 sps:$4 sm:$0xff]  }
 0x1bc   :  { %2388 = vmatprep.subr.bf16.mxu0 %v3634_v12  ;;  %2429 = vmatprep.subr.bf16.mxu1 %v3712_v27  ;;  %v3685_v12 = vld [vmem:[#allocation10 + $0x4c] ss:$16 sps:$4 sm:$0xff]   ;;  %v3725_v27 = vld [vmem:[#allocation10 + $0x168] ss:$16 sps:$4 sm:$0xff]  }
 0x1bf   :  { %2389 = vmatpush2.bf16.msra.mxu0 %v3632_v13  ;;  %2430 = vmatpush2.bf16.msra.mxu1 %v3710_v26  ;;  %v3683_v13 = vld [vmem:[#allocation10 + $0x48] ss:$16 sps:$4 sm:$0xff]   ;;  %v3727_v26 = vld [vmem:[#allocation10 + $0x16c] ss:$16 sps:$4 sm:$0xff]  }
 0x1c0   :  { %2390 = vmatprep.subr.bf16.mxu0 %v3637_v16  ;;  %2431 = vmatprep.subr.bf16.mxu1 %v3718_v32  ;;  %v3697_v16 = vld [vmem:[#allocation10 + $0xc] ss:$16 sps:$4 sm:$0xff]  }
 0x1c1   :  { %v3739_v32 = vld [vmem:[#allocation10 + $0x12c] ss:$16 sps:$4 sm:$0xff]  }
 0x1c3   :  { %2391 = vmatpush2.bf16.msra.mxu0 %v3635_v17  ;;  %2432 = vmatpush2.bf16.msra.mxu1 %v3716_v31  ;;  %v3695_v17 = vld [vmem:[#allocation10 + $0x8] ss:$16 sps:$4 sm:$0xff]  }
 0x1c4   :  { %2392 = vmatprep.subr.bf16.mxu0 %v3640_v20  ;;  %2433 = vmatprep.subr.bf16.mxu1 %v3724_v36  ;;  %v3709_v20 = vld [vmem:[#allocation10 + $0x1cc] ss:$16 sps:$4 sm:$0xff]   ;;  %v3731_v31 = vld [vmem:[#allocation10 + $0x148] ss:$16 sps:$4 sm:$0xff]  }
 0x1c7   :  { %2393 = vmatpush2.bf16.msra.mxu0 %v3638_v21  ;;  %2434 = vmatpush2.bf16.msra.mxu1 %v3722_v35  ;;  %v3707_v21 = vld [vmem:[#allocation10 + $0x1c8] ss:$16 sps:$4 sm:$0xff]  }
 0x1c8   :  { %2394 = vmatprep.subr.bf16.mxu0 %v3643_v24  ;;  %2435 = vmatprep.subr.bf16.mxu1 %v3730_v40  ;;  %v3721_v24 = vld [vmem:[#allocation10 + $0x18c] ss:$16 sps:$4 sm:$0xff]  }
 0x1cb   :  { %2395 = vmatpush2.bf16.msra.mxu0 %v3641_v25  ;;  %2436 = vmatpush2.bf16.msra.mxu1 %v3728_v39  ;;  %v3719_v25 = vld [vmem:[#allocation10 + $0x188] ss:$16 sps:$4 sm:$0xff]  }
 0x1cc   :  { %2396 = vmatprep.subr.bf16.mxu0 %v3646_v28  ;;  %2437 = vmatprep.subr.bf16.mxu1 %v3736_v41  ;;  %v3733_v28 = vld [vmem:[#allocation10 + $0x14c] ss:$16 sps:$4 sm:$0xff]  }
 0x1cd   :  { %v3745_v41 = vld [vmem:[#allocation10 + $0x10c] ss:$16 sps:$4 sm:$0xff]  }
 0x1cf   :  { %2397 = vmatpush2.bf16.msra.mxu0 %v3644_v29  ;;  %2438 = vmatpush2.bf16.msra.mxu1 %v3734_v42  ;;  %v757_v29 = vrot.slane %v4087_v46, %v4066_v8 }
 0x1d0   :  { %2398 = vmatprep.subr.bf16.mxu0 %v3649_v33  ;;  %2439 = vmatprep.subr.bf16.mxu1 %v3742_v43  ;;  %v761_v33 = vrot.slane %v4087_v46, %v4070_v11 }
 0x1d3   :  { %2399 = vmatpush2.bf16.msra.mxu0 %v3647_v34  ;;  %2440 = vmatpush2.bf16.msra.mxu1 %v3740_v44 }
 0x1d4   :  { %2450 = vmatprep.subr.bf16.mxu0 %v3655_v38  ;;  %2491 = vmatprep.subr.bf16.mxu1 %v3748_v45  ;;  %v3737_v38 = vld [vmem:[#allocation10 + $0x128] ss:$16 sps:$4 sm:$0xff]  }
 0x216   :  { %v1440_v49 = vpop.f32.mrf.mxu0  ;;  %v1481_v50 = vpop.f32.mrf.mxu1 }
 0x217   :  { %v1441_v37 = vadd.f32 %v1440_v49, %v749_v47 }
 0x218   :  { %v1442_v51 = vpop.f32.mrf.mxu0  ;;  %v1483_v30 = vpop.f32.mrf.mxu1 }
 0x219   :  { %v1482_v52 = vadd.f32 %v1481_v50, %v1441_v37  ;;  %v1443_v53 = vadd.f32 %v1442_v51, %v753_v48  ;;  %v3743_v48 = vld [vmem:[#allocation10 + $0x108] ss:$16 sps:$4 sm:$0xff]  }
 0x21a   :  { %v1444_v54 = vpop.f32.mrf.mxu0  ;;  %v1485_v55 = vpop.f32.mrf.mxu1 }
 0x21b   :  { %v1484_v56 = vadd.f32 %v1483_v30, %v1443_v53  ;;  %v1570_v57 = vmax.f32 %v1482_v52, 0.0  ;;  %v3746_v30 = vld [vmem:[#allocation10 + $0x2e8] ss:$16 sps:$4 sm:$0xff]   ;;  %v3751_v53 = vld [vmem:[#allocation10 + $0x2cc] ss:$16 sps:$4 sm:$0xff]  }
 0x21c   :  { %v1445_v58 = vpop.f32.mrf.mxu0  ;;  %v1486_v59 = vpop.f32.mrf.mxu1  ;;  %v3749_v54 = vld [vmem:[#allocation10 + $0x2c8] ss:$16 sps:$4 sm:$0xff]   ;;  %v3754_v55 = vld [vmem:[#allocation10 + $0x2ac] ss:$16 sps:$4 sm:$0xff]  }
 0x21d   :  { %v1571_v60 = vmax.f32 %v1484_v56, 0.0  ;;  %v4093_v63 = vpack.c.bf16 %v1570_v57, %v1570_v57  ;;  %v3752_v56 = vld [vmem:[#allocation10 + $0x2a8] ss:$16 sps:$4 sm:$0xff]   ;;  %v3757_v57 = vld [vmem:[#allocation10 + $0x28c] ss:$16 sps:$4 sm:$0xff]  }
 0x21e   :  { %v3794_v58 = vld [vmem:[#allocation11 + $0x78] sm:$0xff]  }
 0x21f   :  { %v1575_v61 = vpack.c.bf16 %v1571_v60, %v1571_v60  ;;  %v3795_v59 = vld [vmem:[#allocation11 + $0x38] sm:$0xff]   ;;  %v3796_v60 = vld [vmem:[#allocation11 + $0x70] sm:$0xff]  }
 0x221   :  { %2400 = vmatprep.mubr.bf16.mxu0 %v1575_v61 }
 0x222   :  { %2401 = vmatmul.mubr.bf16.vlgmr.msra.gmra.mxu0 %v4093_v63 }
 0x223   :  { %2451 = vmatpush1.bf16.msra.mxu0 %v3653_v62  ;;  %2482 = vmatprep.mubr.bf16.mxu0 %v1575_v61  ;;  %v3755_v61 = vld [vmem:[#allocation10 + $0x288] ss:$16 sps:$4 sm:$0xff]   ;;  %v3797_v62 = vld [vmem:[#allocation11 + $0x30] sm:$0xff]  }
 0x224   :  { %2452 = vmatprep.subr.bf16.mxu0 %v3661_v0  ;;  %v3760_v0 = vld [vmem:[#allocation10 + $0x26c] ss:$16 sps:$4 sm:$0xff]  }
 0x227   :  { %2453 = vmatpush1.bf16.msra.mxu0 %v3659_v1  ;;  %v3758_v1 = vld [vmem:[#allocation10 + $0x268] ss:$16 sps:$4 sm:$0xff]  }
 0x228   :  { %2454 = vmatprep.subr.bf16.mxu0 %v3667_v2  ;;  %v3799_v2 = vld [vmem:[#allocation11 + $0x28] sm:$0xff]  }
 0x22b   :  { %2455 = vmatpush1.bf16.msra.mxu0 %v3665_v3  ;;  %v3763_v3 = vld [vmem:[#allocation10 + $0x24c] ss:$16 sps:$4 sm:$0xff]  }
 0x22c   :  { %2456 = vmatprep.subr.bf16.mxu0 %v3673_v4  ;;  %v3800_v4 = vld [vmem:[#allocation11 + $0x60] sm:$0xff]  }
 0x22f   :  { %2457 = vmatpush1.bf16.msra.mxu0 %v3671_v5  ;;  %v3761_v5 = vld [vmem:[#allocation10 + $0x248] ss:$16 sps:$4 sm:$0xff]  }
 0x230   :  { %2458 = vmatprep.subr.bf16.mxu0 %v3679_v6  ;;  %v3801_v6 = vld [vmem:[#allocation11 + $0x20] sm:$0xff]  }
 0x233   :  { %2459 = vmatpush1.bf16.msra.mxu0 %v3677_v9  ;;  %v3766_v9 = vld [vmem:[#allocation10 + $0x22c] ss:$16 sps:$4 sm:$0xff]  }
 0x234   :  { %2460 = vmatprep.subr.bf16.mxu0 %v3685_v12  ;;  %v3802_v12 = vld [vmem:[#allocation11 + $0x58] sm:$0xff]  }
 0x237   :  { %2461 = vmatpush1.bf16.msra.mxu0 %v3683_v13  ;;  %v3764_v13 = vld [vmem:[#allocation10 + $0x228] ss:$16 sps:$4 sm:$0xff]  }
 0x238   :  { %2462 = vmatprep.subr.bf16.mxu0 %v3691_v14  ;;  %v3803_v14 = vld [vmem:[#allocation11 + $0x18] sm:$0xff]  }
 0x23b   :  { %2463 = vmatpush1.bf16.msra.mxu0 %v3689_v15  ;;  %v3769_v15 = vld [vmem:[#allocation10 + $0x20c] ss:$16 sps:$4 sm:$0xff]  }
 0x23c   :  { %2464 = vmatprep.subr.bf16.mxu0 %v3697_v16  ;;  %v3804_v16 = vld [vmem:[#allocation11 + $0x50] sm:$0xff]  }
 0x23f   :  { %2465 = vmatpush1.bf16.msra.mxu0 %v3695_v17  ;;  %v3767_v17 = vld [vmem:[#allocation10 + $0x208] ss:$16 sps:$4 sm:$0xff]  }
 0x240   :  { %2466 = vmatprep.subr.bf16.mxu0 %v3703_v18  ;;  %v3805_v18 = vld [vmem:[#allocation11 + $0x10] sm:$0xff]  }
 0x243   :  { %2467 = vmatpush2.bf16.msra.mxu0 %v3701_v19  ;;  %v3772_v19 = vld [vmem:[#allocation10 + $0x3ec] ss:$16 sps:$4 sm:$0xff]  }
 0x244   :  { %2468 = vmatprep.subr.bf16.mxu0 %v3709_v20  ;;  %v3770_v20 = vld [vmem:[#allocation10 + $0x3e8] ss:$16 sps:$4 sm:$0xff]  }
 0x247   :  { %2469 = vmatpush2.bf16.msra.mxu0 %v3707_v21  ;;  %v3775_v21 = vld [vmem:[#allocation10 + $0x3cc] ss:$16 sps:$4 sm:$0xff]  }
 0x248   :  { %2470 = vmatprep.subr.bf16.mxu0 %v3715_v22  ;;  %v3773_v22 = vld [vmem:[#allocation10 + $0x3c8] ss:$16 sps:$4 sm:$0xff]  }
 0x24b   :  { %2471 = vmatpush2.bf16.msra.mxu0 %v3713_v23  ;;  %v3778_v23 = vld [vmem:[#allocation10 + $0x3ac] ss:$16 sps:$4 sm:$0xff]  }
 0x24c   :  { %2472 = vmatprep.subr.bf16.mxu0 %v3721_v24  ;;  %v3776_v24 = vld [vmem:[#allocation10 + $0x3a8] ss:$16 sps:$4 sm:$0xff]  }
 0x24f   :  { %2473 = vmatpush2.bf16.msra.mxu0 %v3719_v25  ;;  %v3781_v25 = vld [vmem:[#allocation10 + $0x38c] ss:$16 sps:$4 sm:$0xff]  }
 0x250   :  { %2474 = vmatprep.subr.bf16.mxu0 %v3727_v26  ;;  %v3779_v26 = vld [vmem:[#allocation10 + $0x388] ss:$16 sps:$4 sm:$0xff]  }
 0x253   :  { %2475 = vmatpush2.bf16.msra.mxu0 %v3725_v27  ;;  %v3784_v27 = vld [vmem:[#allocation10 + $0x36c] ss:$16 sps:$4 sm:$0xff]  }
 0x254   :  { %2476 = vmatprep.subr.bf16.mxu0 %v3733_v28  ;;  %v3782_v28 = vld [vmem:[#allocation10 + $0x368] ss:$16 sps:$4 sm:$0xff]  }
 0x256   :  { %v1522_v34 = vpop.f32.mrf.mxu0  ;;  %v1563_v35 = vpop.f32.mrf.mxu1 }
 0x257   :  { %v1523_v36 = vadd.f32 %v1522_v34, %v757_v29  ;;  %2477 = vmatpush2.bf16.msra.mxu0 %v3731_v31  ;;  %v3787_v29 = vld [vmem:[#allocation10 + $0x34c] ss:$16 sps:$4 sm:$0xff]   ;;  %v3785_v31 = vld [vmem:[#allocation10 + $0x348] ss:$16 sps:$4 sm:$0xff]  }
 0x258   :  { %v1524_v39 = vpop.f32.mrf.mxu0  ;;  %v1565_v40 = vpop.f32.mrf.mxu1  ;;  %2478 = vmatprep.subr.bf16.mxu0 %v3739_v32  ;;  %v3790_v32 = vld [vmem:[#allocation10 + $0x32c] ss:$16 sps:$4 sm:$0xff]  }
 0x259   :  { %v1564_v42 = vadd.f32 %v1563_v35, %v1523_v36  ;;  %v1525_v43 = vadd.f32 %v1524_v39, %v761_v33  ;;  %v3788_v33 = vld [vmem:[#allocation10 + $0x328] ss:$16 sps:$4 sm:$0xff]   ;;  %v3793_v34 = vld [vmem:[#allocation10 + $0x30c] ss:$16 sps:$4 sm:$0xff]   ;;  %v3808_v39 = vld [vmem:[#allocation11 + $0x40] sm:$0xff]  }
 0x25a   :  { %v1526_v44 = vpop.f32.mrf.mxu0  ;;  %v1567_v45 = vpop.f32.mrf.mxu1  ;;  %v3791_v35 = vld [vmem:[#allocation10 + $0x308] ss:$16 sps:$4 sm:$0xff]  }
 0x25b   :  { %v1566_v47 = vadd.f32 %v1565_v40, %v1525_v43  ;;  %2479 = vmatpush2.bf16.msra.mxu0 %v3737_v38  ;;  %v1572_v49 = vmax.f32 %v1564_v42, 0.0  ;;  %v3806_v36 = vld [vmem:[#allocation11 + $0x48] sm:$0xff]   ;;  %v3809_v40 = vld [vmem:[#allocation11] sm:$0xff]   ;;  %v3811_v42 = vld [vmem:[#allocation11 + $0xb8] sm:$0xff]  }
 0x25c   :  { %v1527_v50 = vpop.f32.mrf.mxu0  ;;  %v1568_v37 = vpop.f32.mrf.mxu1  ;;  %2480 = vmatprep.subr.bf16.mxu0 %v3745_v41  ;;  %v3807_v38 = vld [vmem:[#allocation11 + $0x8] sm:$0xff]   ;;  %v3810_v41 = vld [vmem:[#allocation11 + $0xf8] sm:$0xff]   ;;  %v3812_v43 = vld [vmem:[#allocation11 + $0xf0] sm:$0xff]  }
 0x25d   :  { %v1573_v46 = vmax.f32 %v1566_v47, 0.0  ;;  %v4100_v52 = vpack.c.bf16 %v1572_v49, %v1572_v49  ;;  %v3813_v44 = vld [vmem:[#allocation11 + $0xb0] sm:$0xff]   ;;  %v3814_v45 = vld [vmem:[#allocation11 + $0xe8] sm:$0xff]   ;;  %v3817_v49 = vld [vmem:[#allocation11 + $0xa0] sm:$0xff]  }
 0x25e   :  { %v3815_v47 = vld [vmem:[#allocation11 + $0xa8] sm:$0xff]   ;;  %v3818_v50 = vld [vmem:[#allocation11 + $0xd8] sm:$0xff]  }
 0x25f   :  { %v1577_v51 = vpack.c.bf16 %v1573_v46, %v1573_v46  ;;  %2481 = vmatpush2.bf16.msra.mxu0 %v3743_v48  ;;  %v3816_v48 = vld [vmem:[#allocation11 + $0xe0] sm:$0xff]   ;;  %v3819_v37 = vld [vmem:[#allocation11 + $0x98] sm:$0xff]   ;;  %v3820_v46 = vld [vmem:[#allocation11 + $0xd0] sm:$0xff]  }
 0x260   :  { %3257 = vmatprep.subr.bf16.mxu0 %v3794_v58 }
 0x261   :  { %2441 = vmatprep.mubr.bf16.mxu1 %v1577_v51 }
 0x262   :  { %2442 = vmatmul.mubr.bf16.vlgmr.msra.gmra.mxu1 %v4100_v52  ;;  %2483 = vmatmul.mubr.bf16.vlgmr.msra.gmra.mxu0 %v4093_v63  ;;  %v3798_v63 = vld [vmem:[#allocation11 + $0x68] sm:$0xff]  }
 0x263   :  { %2492 = vmatpush1.bf16.msra.mxu1 %v3746_v30  ;;  %2523 = vmatprep.mubr.bf16.mxu1 %v1577_v51  ;;  %v3821_v51 = vld [vmem:[#allocation11 + $0x90] sm:$0xff]  }
 0x264   :  { %2493 = vmatprep.subr.bf16.mxu1 %v3751_v53  ;;  %3258 = vmatpush3.bf16.msra.mxu0 %v3795_v59  ;;  %v3823_v53 = vld [vmem:[#allocation11 + $0x88] sm:$0xff]   ;;  %v1706_v59 = vld [vmem:[%s4124_s6] sm:$0xf] }
 0x265   :  { %3259 = vmatprep.subr.bf16.mxu0 %v3796_v60  ;;  %v1711_v60 = vrot.slane %v1706_v59, %v4064_v7  ;;  %v1719_v7 = vrot.slane %v1706_v59, %v4066_v8 }
 0x267   :  { %2494 = vmatpush1.bf16.msra.mxu1 %v3749_v54 }
 0x268   :  { %2495 = vmatprep.subr.bf16.mxu1 %v3754_v55  ;;  %3260 = vmatpush3.bf16.msra.mxu0 %v3797_v62 }
 0x269   :  { %3261 = vmatprep.subr.bf16.mxu0 %v3798_v63 }
 0x26b   :  { %2496 = vmatpush1.bf16.msra.mxu1 %v3752_v56  ;;  %v3824_v56 = vld [vmem:[#allocation11 + $0xc0] sm:$0xff]  }
 0x26c   :  { %2497 = vmatprep.subr.bf16.mxu1 %v3757_v57  ;;  %3262 = vmatpush3.bf16.msra.mxu0 %v3799_v2  ;;  %v3825_v57 = vld [vmem:[#allocation11 + $0x80] sm:$0xff]  }
 0x26d   :  { %3263 = vmatprep.subr.bf16.mxu0 %v3800_v4 }
 0x26f   :  { %2498 = vmatpush1.bf16.msra.mxu1 %v3755_v61  ;;  %v1715_v61 = vrot.slane %v1706_v59, %v4068_v10  ;;  %v1723_v10 = vrot.slane %v1706_v59, %v4070_v11  ;;  %v3224_v11 = vld [vmem:[%s4126_s8] ss:$0 sm:$0xff] }
 0x270   :  { %2499 = vmatprep.subr.bf16.mxu1 %v3760_v0  ;;  %3264 = vmatpush3.bf16.msra.mxu0 %v3801_v6 }
 0x271   :  { %3265 = vmatprep.subr.bf16.mxu0 %v3802_v12 }
 0x273   :  { %2500 = vmatpush1.bf16.msra.mxu1 %v3758_v1 }
 0x274   :  { %2501 = vmatprep.subr.bf16.mxu1 %v3763_v3  ;;  %3266 = vmatpush3.bf16.msra.mxu0 %v3803_v14 }
 0x275   :  { %3267 = vmatprep.subr.bf16.mxu0 %v3804_v16 }
 0x277   :  { %2502 = vmatpush1.bf16.msra.mxu1 %v3761_v5 }
 0x278   :  { %2503 = vmatprep.subr.bf16.mxu1 %v3766_v9  ;;  %3268 = vmatpush3.bf16.msra.mxu0 %v3805_v18 }
 0x279   :  { %3269 = vmatprep.subr.bf16.mxu0 %v3806_v36 }
 0x27b   :  { %2504 = vmatpush1.bf16.msra.mxu1 %v3764_v13 }
 0x27c   :  { %2505 = vmatprep.subr.bf16.mxu1 %v3769_v15  ;;  %3270 = vmatpush3.bf16.msra.mxu0 %v3807_v38 }
 0x27d   :  { %3271 = vmatprep.subr.bf16.mxu0 %v3808_v39 }
 0x27f   :  { %2506 = vmatpush1.bf16.msra.mxu1 %v3767_v17 }
 0x280   :  { %2507 = vmatprep.subr.bf16.mxu1 %v3772_v19  ;;  %3272 = vmatpush3.bf16.msra.mxu0 %v3809_v40 }
 0x283   :  { %2508 = vmatpush2.bf16.msra.mxu1 %v3770_v20 }
 0x284   :  { %2509 = vmatprep.subr.bf16.mxu1 %v3775_v21 }
 0x287   :  { %2510 = vmatpush2.bf16.msra.mxu1 %v3773_v22 }
 0x288   :  { %2511 = vmatprep.subr.bf16.mxu1 %v3778_v23 }
 0x28b   :  { %2512 = vmatpush2.bf16.msra.mxu1 %v3776_v24 }
 0x28c   :  { %2513 = vmatprep.subr.bf16.mxu1 %v3781_v25 }
 0x28f   :  { %2514 = vmatpush2.bf16.msra.mxu1 %v3779_v26 }
 0x290   :  { %2515 = vmatprep.subr.bf16.mxu1 %v3784_v27 }
 0x293   :  { %2516 = vmatpush2.bf16.msra.mxu1 %v3782_v28 }
 0x294   :  { %2517 = vmatprep.subr.bf16.mxu1 %v3787_v29 }
 0x297   :  { %2518 = vmatpush2.bf16.msra.mxu1 %v3785_v31 }
 0x298   :  { %2519 = vmatprep.subr.bf16.mxu1 %v3790_v32 }
 0x29b   :  { %2520 = vmatpush2.bf16.msra.mxu1 %v3788_v33 }
 0x29c   :  { %2521 = vmatprep.subr.bf16.mxu1 %v3793_v34 }
 0x29f   :  { %2522 = vmatpush2.bf16.msra.mxu1 %v3791_v35 }
 0x2a0   :  { %3279 = vmatprep.subr.bf16.mxu1 %v3810_v41 }
 0x2a2   :  { %2524 = vmatmul.mubr.bf16.vlgmr.msra.gmra.mxu1 %v4100_v52  ;;  %v3822_v52 = vld [vmem:[#allocation11 + $0xc8] sm:$0xff]  }
 0x2a3   :  { %3280 = vmatpush3.bf16.msra.mxu1 %v3811_v42 }
 0x2a4   :  { %3281 = vmatprep.subr.bf16.mxu1 %v3812_v43 }
 0x2a7   :  { %3282 = vmatpush3.bf16.msra.mxu1 %v3813_v44 }
 0x2a8   :  { %3283 = vmatprep.subr.bf16.mxu1 %v3814_v45 }
 0x2ab   :  { %3284 = vmatpush3.bf16.msra.mxu1 %v3815_v47 }
 0x2ac   :  { %3285 = vmatprep.subr.bf16.mxu1 %v3816_v48 }
 0x2af   :  { %3286 = vmatpush3.bf16.msra.mxu1 %v3817_v49 }
 0x2b0   :  { %3287 = vmatprep.subr.bf16.mxu1 %v3818_v50 }
 0x2b3   :  { %3288 = vmatpush3.bf16.msra.mxu1 %v3819_v37 }
 0x2b4   :  { %3289 = vmatprep.subr.bf16.mxu1 %v3820_v46 }
 0x2b7   :  { %3290 = vmatpush3.bf16.msra.mxu1 %v3821_v51 }
 0x2b8   :  { %3291 = vmatprep.subr.bf16.mxu1 %v3822_v52 }
 0x2bb   :  { %3292 = vmatpush3.bf16.msra.mxu1 %v3823_v53 }
 0x2bc   :  { %3293 = vmatprep.subr.bf16.mxu1 %v3824_v56 }
 0x2bf   :  { %3294 = vmatpush3.bf16.msra.mxu1 %v3825_v57 }
 0x2e2   :  { %v2402_v30 = vpop.f32.mrf.mxu0 }
 0x2e3   :  { %v2403_v62 = vadd.f32 %v2402_v30, %v1711_v60 }
 0x2e4   :  { %v2404_v54 = vpop.f32.mrf.mxu0 }
 0x2e5   :  { %v2405_v1 = vadd.f32 %v2404_v54, %v1715_v61 }
 0x2e6   :  { %v2406_v55 = vpop.f32.mrf.mxu0 }
 0x2e8   :  { %v2407_v58 = vpop.f32.mrf.mxu0 }
 0x322   :  { %v2443_v0 = vpop.f32.mrf.mxu1  ;;  %v2484_v63 = vpop.f32.mrf.mxu0 }
 0x323   :  { %v2444_v2 = vadd.f32 %v2443_v0, %v2403_v62  ;;  %v2485_v18 = vadd.f32 %v2484_v63, %v1719_v7 }
 0x324   :  { %v2445_v3 = vpop.f32.mrf.mxu1  ;;  %v2486_v4 = vpop.f32.mrf.mxu0 }
 0x325   :  { %v2446_v5 = vadd.f32 %v2445_v3, %v2405_v1  ;;  %v2532_v6 = vmax.f32 %v2444_v2, 0.0  ;;  %v2487_v20 = vadd.f32 %v2486_v4, %v1723_v10 }
 0x326   :  { %v2447_v9 = vpop.f32.mrf.mxu1  ;;  %v2488_v12 = vpop.f32.mrf.mxu0 }
 0x327   :  { %v2533_v13 = vmax.f32 %v2446_v5, 0.0  ;;  %v2536_v17 = vpack.c.bf16 %v2532_v6, %v2532_v6 }
 0x328   :  { %v2448_v14 = vpop.f32.mrf.mxu1  ;;  %v2489_v15 = vpop.f32.mrf.mxu0 }
 0x329   :  { %v2537_v16 = vpack.c.bf16 %v2533_v13, %v2533_v13 }
 0x32b   :  { %2835 = vmatprep.mubr.bf16.mxu0 %v2537_v16 }
 0x32c   :  { %2836 = vmatmul.mubr.bf16.vlgmr.msra.gmra.mxu0 %v2536_v17 }
 0x362   :  { %v2525_v19 = vpop.f32.mrf.mxu1 }
 0x363   :  { %v2526_v21 = vadd.f32 %v2525_v19, %v2485_v18 }
 0x364   :  { %v2527_v22 = vpop.f32.mrf.mxu1 }
 0x365   :  { %v2528_v23 = vadd.f32 %v2527_v22, %v2487_v20  ;;  %v2534_v24 = vmax.f32 %v2526_v21, 0.0 }
 0x366   :  { %v2529_v25 = vpop.f32.mrf.mxu1 }
 0x367   :  { %v2535_v26 = vmax.f32 %v2528_v23, 0.0  ;;  %v2538_v29 = vpack.c.bf16 %v2534_v24, %v2534_v24 }
 0x368   :  { %v2530_v27 = vpop.f32.mrf.mxu1 }
 0x369   :  { %v2539_v28 = vpack.c.bf16 %v2535_v26, %v2535_v26 }
 0x36b   :  { %2875 = vmatprep.mubr.bf16.mxu1 %v2539_v28 }
 0x36c   :  { %2876 = vmatmul.mubr.bf16.vlgmr.msra.gmra.mxu1 %v2538_v29 }
 0x3ec   :  { %v3273_v31 = vpop.f32.mrf.mxu0 }
 0x3ee   :  { %v3274_v32 = vpop.f32.mrf.mxu0 }
 0x3ef   :  { %v3275_v34 = vadd.f32 %v3274_v32, %v3273_v31 }
 0x3f0   :  { %v3276_v33 = vpop.f32.mrf.mxu0 }
 0x3f1   :  { %v2838_v38 = vadd.f32 %v3275_v34, %v3224_v11 }
 0x3f2   :  { %v3277_v8 = vpop.f32.mrf.mxu0 }
 0x42c   :  { %v3295_v35 = vpop.f32.mrf.mxu1 }
 0x42e   :  { %v3296_v36 = vpop.f32.mrf.mxu1 }
 0x42f   :  { %v3297_v39 = vadd.f32 %v3296_v36, %v3295_v35 }
 0x430   :  { %v3298_v40 = vpop.f32.mrf.mxu1 }
 0x431   :  { %v2878_v41 = vadd.f32 %v3297_v39, %v2838_v38 }
 0x432   :  { %v3299_v42 = vpop.f32.mrf.mxu1 }
 0x433   :  { %2883 = vst [vmem:[#allocation13] sm:$0xff] %v2878_v41 }
 0x434   :  { %3957 = shalt.err (!%p3954_p6)
}
 0x435   :  { %2893 = dma.vmem_to_hbm [thread:$0]  %s2891_s21, 128, %s4127_s9, [#allocation4]  }
 0x436   :  { %3974 = dma.done.wait [#allocation4], 128  }
 0x437   :  { %3975 = vsyncadd [#allocation4], 4294967168 }
 0x438   :  { %2897 = vsyncpa [#allocation3], 1 }
 0x439   :  { %2898 = vsyncpa [#allocation6], 1 }
 0x43a   :  { %2899 = vsyncpa [#allocation9], 1 }
 0x43b   :  { %2900 = vsyncpa [#allocation12], 1 }
 0x43c   :  { %2901 = vsyncpa [#allocation4], 1 }

</bundles_post_ra>
